<compile_context>
chip_gen: v5e
topology: v5e:2x2
jax: 0.10.0
libtpu: 0.0.40
codegen_flags: <defaults>
</compile_context>

<pallas_src>
import functools

import jax
import jax.numpy as jnp
import numpy as np
from jax.experimental import pallas as pl
from jax.experimental.pallas import tpu as pltpu


# ------------------------------------------------------------------ kernel
def _lenet_kernel(x_ref, k1_ref, b1_ref, cs1_ref, rs1_ref,
                  k2_ref, b2_ref, cs2_ref, rs2_ref,
                  wf1_ref, bf1_ref, wf2_ref, bf2_ref, wf3_ref, bf3_ref,
                  o_ref):
    """One sample per grid step.  Activations are 2-D VMEM tiles:
    rows = H (sublanes), lanes = channel-block x W."""
    f32 = jnp.float32
    xn = x_ref[0, 0]                                            # (32, 32)

    # conv1 + bias + relu: 3 block-Toeplitz matmuls -> (30, 6*30)
    acc = jnp.dot(xn[0:30, :], k1_ref[0], preferred_element_type=f32)
    for kh in range(1, 3):
        acc = acc + jnp.dot(xn[kh:kh + 30, :], k1_ref[kh],
                            preferred_element_type=f32)
    h1 = jnp.maximum(acc + b1_ref[...], 0.0)                    # (30, 180)

    # 2x2 max-pool: adjacent max + 0/1 selection matmuls -> (15, 6*15)
    cadj = jnp.maximum(h1[:, 0:179], h1[:, 1:180])              # (30, 179)
    csel = jnp.dot(cadj, cs1_ref[...], preferred_element_type=f32)   # (30, 90)
    radj = jnp.maximum(csel[0:29, :], csel[1:30, :])            # (29, 90)
    p1 = jnp.dot(rs1_ref[...], radj, preferred_element_type=f32)     # (15, 90)

    # conv2 + bias + relu -> (13, 16*13)
    acc = jnp.dot(p1[0:13, :], k2_ref[0], preferred_element_type=f32)
    for kh in range(1, 3):
        acc = acc + jnp.dot(p1[kh:kh + 13, :], k2_ref[kh],
                            preferred_element_type=f32)
    h2 = jnp.maximum(acc + b2_ref[...], 0.0)                    # (13, 208)

    # 2x2 max-pool (floor) -> (6, 16*6)
    cadj2 = jnp.maximum(h2[:, 0:207], h2[:, 1:208])             # (13, 207)
    csel2 = jnp.dot(cadj2, cs2_ref[...], preferred_element_type=f32)  # (13, 96)
    radj2 = jnp.maximum(csel2[0:12, :], csel2[1:13, :])         # (12, 96)
    p2 = jnp.dot(rs2_ref[...], radj2, preferred_element_type=f32)     # (6, 96)

    # fc1 (contract the 6 pooled rows one at a time) -> relu -> fc2 -> fc3
    acc = jnp.dot(p2[0:1, :], wf1_ref[0], preferred_element_type=f32)
    for ho in range(1, 6):
        acc = acc + jnp.dot(p2[ho:ho + 1, :], wf1_ref[ho],
                            preferred_element_type=f32)
    f1 = jnp.maximum(acc + bf1_ref[...], 0.0)                   # (1, 120)
    f2 = jnp.maximum(jnp.dot(f1, wf2_ref[...], preferred_element_type=f32)
                     + bf2_ref[...], 0.0)                       # (1, 84)
    f3 = jnp.dot(f2, wf3_ref[...], preferred_element_type=f32) + bf3_ref[...]
    o_ref[0] = f3                                               # (1, 10)


# ------------------------------------------------------- host-side packing
def pack_params(params):
    """Repack PyTorch-layout weights into MXU-friendly constants (runs once)."""
    w1 = np.asarray(params["conv1_w"], np.float32)   # (6, 1, 3, 3)
    b1 = np.asarray(params["conv1_b"], np.float32)
    w2 = np.asarray(params["conv2_w"], np.float32)   # (16, 6, 3, 3)
    b2 = np.asarray(params["conv2_b"], np.float32)
    fw1 = np.asarray(params["fc1_w"], np.float32)    # (120, 576)
    fb1 = np.asarray(params["fc1_b"], np.float32)
    fw2 = np.asarray(params["fc2_w"], np.float32)    # (84, 120)
    fb2 = np.asarray(params["fc2_b"], np.float32)
    fw3 = np.asarray(params["fc3_w"], np.float32)    # (10, 84)
    fb3 = np.asarray(params["fc3_b"], np.float32)

    C1, C2 = 6, 16
    H1, O1, P1 = 32, 30, 15      # conv1 in/out spatial, pool1 out
    O2, P2 = 13, 6               # conv2 out spatial, pool2 out

    # conv1 block-Toeplitz: out[i, c*O1+j] = sum_kh x[i+kh, :] @ K1[kh]
    K1 = np.zeros((3, H1, C1 * O1), np.float32)
    for kh in range(3):
        for c in range(C1):
            for j in range(O1):
                for kw in range(3):
                    K1[kh, j + kw, c * O1 + j] = w1[c, 0, kh, kw]
    b1row = np.repeat(b1, O1)[None, :]                           # (1, 180)

    # pool1 selection matrices (pick even indices after adjacent max)
    CS1 = np.zeros((C1 * O1 - 1, C1 * P1), np.float32)           # (179, 90)
    for c in range(C1):
        for j in range(P1):
            CS1[c * O1 + 2 * j, c * P1 + j] = 1.0
    RS1 = np.zeros((P1, O1 - 1), np.float32)                     # (15, 29)
    for i in range(P1):
        RS1[i, 2 * i] = 1.0

    # conv2 block-Toeplitz over (channel-block x width) lanes
    K2 = np.zeros((3, C1 * P1, C2 * O2), np.float32)             # (3, 90, 208)
    for kh in range(3):
        for c2 in range(C2):
            for c1 in range(C1):
                for j in range(O2):
                    for kw in range(3):
                        K2[kh, c1 * P1 + j + kw, c2 * O2 + j] = w2[c2, c1, kh, kw]
    b2row = np.repeat(b2, O2)[None, :]                           # (1, 208)

    CS2 = np.zeros((C2 * O2 - 1, C2 * P2), np.float32)           # (207, 96)
    for c in range(C2):
        for j in range(P2):
            CS2[c * O2 + 2 * j, c * P2 + j] = 1.0
    RS2 = np.zeros((P2, O2 - 1), np.float32)                     # (6, 12)
    for i in range(P2):
        RS2[i, 2 * i] = 1.0

    # fc1 weight permuted to the kernel's (h, c*w) feature order
    Wfc1 = (fw1.reshape(120, C2, P2, P2).transpose(2, 1, 3, 0)
            .reshape(P2, C2 * P2, 120).astype(np.float32))       # (6, 96, 120)

    packed = (K1, b1row, CS1, RS1, K2, b2row, CS2, RS2,
              Wfc1, fb1[None, :], fw2.T.copy(), fb2[None, :],
              fw3.T.copy(), fb3[None, :])
    return tuple(jnp.asarray(a) for a in packed)


# ---------------------------------------------------------------- wrapper
def _const_spec(shape):
    ndim = len(shape)
    return pl.BlockSpec(shape, lambda n, _nd=ndim: (0,) * _nd)


@jax.jit
def net_forward(x, packed):
    N = x.shape[0]
    assert x.shape[1:] == (1, 32, 32), x.shape
    in_specs = [pl.BlockSpec((1, 1, 32, 32), lambda n: (n, 0, 0, 0))]
    in_specs += [_const_spec(tuple(a.shape)) for a in packed]
    out = pl.pallas_call(
        _lenet_kernel,
        out_shape=jax.ShapeDtypeStruct((N, 1, 10), jnp.float32),
        grid=(N,),
        in_specs=in_specs,
        out_specs=pl.BlockSpec((1, 1, 10), lambda n: (n, 0, 0)),
        compiler_params=pltpu.CompilerParams(
            dimension_semantics=("parallel",)),
    )(x, *packed)
    return out.reshape(N, 10)


# -------------------------------------------------------------- reference
def reference_forward(x, p):
    def conv(h, w, b):
        out = jax.lax.conv_general_dilated(
            h, w, (1, 1), "VALID",
            dimension_numbers=("NCHW", "OIHW", "NCHW"))
        return out + b[None, :, None, None]

    def pool(h):
        return jax.lax.reduce_window(h, -jnp.inf, jax.lax.max,
                                     (1, 1, 2, 2), (1, 1, 2, 2), "VALID")

    h = pool(jax.nn.relu(conv(x, p["conv1_w"], p["conv1_b"])))
    h = pool(jax.nn.relu(conv(h, p["conv2_w"], p["conv2_b"])))
    h = h.reshape(h.shape[0], -1)
    h = jax.nn.relu(h @ p["fc1_w"].T + p["fc1_b"])
    h = jax.nn.relu(h @ p["fc2_w"].T + p["fc2_b"])
    return h @ p["fc3_w"].T + p["fc3_b"]


def init_params(key):
    ks = jax.random.split(key, 10)

    def w(k, shape, scale):
        return (scale * jax.random.normal(k, shape)).astype(jnp.float32)

    return {
        "conv1_w": w(ks[0], (6, 1, 3, 3), 0.2),
        "conv1_b": w(ks[1], (6,), 0.1),
        "conv2_w": w(ks[2], (16, 6, 3, 3), 0.1),
        "conv2_b": w(ks[3], (16,), 0.1),
        "fc1_w": w(ks[4], (120, 576), 0.05),
        "fc1_b": w(ks[5], (120,), 0.05),
        "fc2_w": w(ks[6], (84, 120), 0.1),
        "fc2_b": w(ks[7], (84,), 0.05),
        "fc3_w": w(ks[8], (10, 84), 0.1),
        "fc3_b": w(ks[9], (10,), 0.05),
    }


if __name__ == "__main__":
    key = jax.random.PRNGKey(0)
    pkey, xkey = jax.random.split(key)
    params = init_params(pkey)
    # LeNet-style Net requires 32x32 single-channel input (=> 16*6*6 flat feats)
    x = jax.random.normal(xkey, (2, 1, 32, 32), dtype=jnp.float32)

    packed = pack_params(params)
    out = net_forward(x, packed)
    out = jax.block_until_ready(out)
    assert out.shape == (2, 10), out.shape

    ref = reference_forward(x, params)
    max_err = float(jnp.max(jnp.abs(out - ref)))
    assert jnp.allclose(out, ref, atol=2e-4, rtol=2e-4), max_err

    print("KERNEL_OK")
</pallas_src>

<mosaic_0001>
module attributes {stable_mosaic.version = 11 : i64} {
  func.func @_lenet_kernel(%arg0: i32, %arg1: memref<1x1x32x32xf32, #tpu.memory_space<vmem>>, %arg2: memref<3x32x180xf32, #tpu.memory_space<vmem>>, %arg3: memref<1x180xf32, #tpu.memory_space<vmem>>, %arg4: memref<179x90xf32, #tpu.memory_space<vmem>>, %arg5: memref<15x29xf32, #tpu.memory_space<vmem>>, %arg6: memref<3x90x208xf32, #tpu.memory_space<vmem>>, %arg7: memref<1x208xf32, #tpu.memory_space<vmem>>, %arg8: memref<207x96xf32, #tpu.memory_space<vmem>>, %arg9: memref<6x12xf32, #tpu.memory_space<vmem>>, %arg10: memref<6x96x120xf32, #tpu.memory_space<vmem>>, %arg11: memref<1x120xf32, #tpu.memory_space<vmem>>, %arg12: memref<120x84xf32, #tpu.memory_space<vmem>>, %arg13: memref<1x84xf32, #tpu.memory_space<vmem>>, %arg14: memref<84x10xf32, #tpu.memory_space<vmem>>, %arg15: memref<1x10xf32, #tpu.memory_space<vmem>>, %arg16: memref<1x1x10xf32, #tpu.memory_space<vmem>>) attributes {dimension_semantics = [#tpu.dimension_semantics<parallel>], iteration_bounds = array<i64: 2>, scalar_prefetch = 0 : i64, scratch_operands = 0 : i64, tpu.core_type = #tpu.core_type<tc>, window_params = [{transform_indices = @transform_0, window_bounds = array<i64: 1, 1, 32, 32>}, {pipeline_mode = #tpu.pipeline_mode<synchronous>, transform_indices = @transform_1, window_bounds = array<i64: 3, 32, 180>}, {pipeline_mode = #tpu.pipeline_mode<synchronous>, transform_indices = @transform_2, window_bounds = array<i64: 1, 180>}, {pipeline_mode = #tpu.pipeline_mode<synchronous>, transform_indices = @transform_3, window_bounds = array<i64: 179, 90>}, {pipeline_mode = #tpu.pipeline_mode<synchronous>, transform_indices = @transform_4, window_bounds = array<i64: 15, 29>}, {pipeline_mode = #tpu.pipeline_mode<synchronous>, transform_indices = @transform_5, window_bounds = array<i64: 3, 90, 208>}, {pipeline_mode = #tpu.pipeline_mode<synchronous>, transform_indices = @transform_6, window_bounds = array<i64: 1, 208>}, {pipeline_mode = #tpu.pipeline_mode<synchronous>, transform_indices = @transform_7, window_bounds = array<i64: 207, 96>}, {pipeline_mode = #tpu.pipeline_mode<synchronous>, transform_indices = @transform_8, window_bounds = array<i64: 6, 12>}, {pipeline_mode = #tpu.pipeline_mode<synchronous>, transform_indices = @transform_9, window_bounds = array<i64: 6, 96, 120>}, {pipeline_mode = #tpu.pipeline_mode<synchronous>, transform_indices = @transform_10, window_bounds = array<i64: 1, 120>}, {pipeline_mode = #tpu.pipeline_mode<synchronous>, transform_indices = @transform_11, window_bounds = array<i64: 120, 84>}, {pipeline_mode = #tpu.pipeline_mode<synchronous>, transform_indices = @transform_12, window_bounds = array<i64: 1, 84>}, {pipeline_mode = #tpu.pipeline_mode<synchronous>, transform_indices = @transform_13, window_bounds = array<i64: 84, 10>}, {pipeline_mode = #tpu.pipeline_mode<synchronous>, transform_indices = @transform_14, window_bounds = array<i64: 1, 10>}, {transform_indices = @transform_15, window_bounds = array<i64: 1, 1, 10>}]} {
    %c0 = arith.constant 0 : index
    %c0_0 = arith.constant 0 : index
    %c0_1 = arith.constant 0 : index
    %c0_2 = arith.constant 0 : index
    %0 = vector.load %arg1[%c0, %c0_0, %c0_1, %c0_2] : memref<1x1x32x32xf32, #tpu.memory_space<vmem>>, vector<1x1x32x32xf32>
    %1 = vector.shape_cast %0 : vector<1x1x32x32xf32> to vector<32x32xf32>
    %2 = vector.extract_strided_slice %1 {offsets = [0, 0], sizes = [30, 32], strides = [1, 1]} : vector<32x32xf32> to vector<30x32xf32>
    %c0_3 = arith.constant 0 : index
    %c0_4 = arith.constant 0 : index
    %c0_5 = arith.constant 0 : index
    %3 = vector.load %arg2[%c0_3, %c0_4, %c0_5] : memref<3x32x180xf32, #tpu.memory_space<vmem>>, vector<1x32x180xf32>
    %4 = vector.shape_cast %3 : vector<1x32x180xf32> to vector<32x180xf32>
    %cst = arith.constant dense<0.000000e+00> : vector<30x180xf32>
    %5 = tpu.matmul %2, %4, %cst {dimension_numbers = #tpu.dot_dimension_numbers<[1], [0], [0], [1], [0, 0, 1, 1], [], []>} : vector<30x32xf32>, vector<32x180xf32>, vector<30x180xf32> -> vector<30x180xf32>
    %6 = vector.extract_strided_slice %1 {offsets = [1, 0], sizes = [30, 32], strides = [1, 1]} : vector<32x32xf32> to vector<30x32xf32>
    %c1 = arith.constant 1 : index
    %c0_6 = arith.constant 0 : index
    %c0_7 = arith.constant 0 : index
    %7 = vector.load %arg2[%c1, %c0_6, %c0_7] : memref<3x32x180xf32, #tpu.memory_space<vmem>>, vector<1x32x180xf32>
    %8 = vector.shape_cast %7 : vector<1x32x180xf32> to vector<32x180xf32>
    %cst_8 = arith.constant dense<0.000000e+00> : vector<30x180xf32>
    %9 = tpu.matmul %6, %8, %cst_8 {dimension_numbers = #tpu.dot_dimension_numbers<[1], [0], [0], [1], [0, 0, 1, 1], [], []>} : vector<30x32xf32>, vector<32x180xf32>, vector<30x180xf32> -> vector<30x180xf32>
    %10 = arith.addf %5, %9 : vector<30x180xf32>
    %11 = vector.extract_strided_slice %1 {offsets = [2, 0], sizes = [30, 32], strides = [1, 1]} : vector<32x32xf32> to vector<30x32xf32>
    %c2 = arith.constant 2 : index
    %c0_9 = arith.constant 0 : index
    %c0_10 = arith.constant 0 : index
    %12 = vector.load %arg2[%c2, %c0_9, %c0_10] : memref<3x32x180xf32, #tpu.memory_space<vmem>>, vector<1x32x180xf32>
    %13 = vector.shape_cast %12 : vector<1x32x180xf32> to vector<32x180xf32>
    %cst_11 = arith.constant dense<0.000000e+00> : vector<30x180xf32>
    %14 = tpu.matmul %11, %13, %cst_11 {dimension_numbers = #tpu.dot_dimension_numbers<[1], [0], [0], [1], [0, 0, 1, 1], [], []>} : vector<30x32xf32>, vector<32x180xf32>, vector<30x180xf32> -> vector<30x180xf32>
    %15 = arith.addf %10, %14 : vector<30x180xf32>
    %c0_12 = arith.constant 0 : index
    %c0_13 = arith.constant 0 : index
    %16 = vector.load %arg3[%c0_12, %c0_13] : memref<1x180xf32, #tpu.memory_space<vmem>>, vector<1x180xf32>
    %17 = vector.broadcast %16 : vector<1x180xf32> to vector<30x180xf32>
    %18 = arith.addf %15, %17 : vector<30x180xf32>
    %cst_14 = arith.constant 0.000000e+00 : f32
    %19 = vector.broadcast %cst_14 : f32 to vector<30x180xf32>
    %20 = arith.maximumf %18, %19 : vector<30x180xf32>
    %21 = vector.extract_strided_slice %20 {offsets = [0, 0], sizes = [30, 179], strides = [1, 1]} : vector<30x180xf32> to vector<30x179xf32>
    %22 = vector.extract_strided_slice %20 {offsets = [0, 1], sizes = [30, 179], strides = [1, 1]} : vector<30x180xf32> to vector<30x179xf32>
    %23 = arith.maximumf %21, %22 : vector<30x179xf32>
    %c0_15 = arith.constant 0 : index
    %c0_16 = arith.constant 0 : index
    %24 = vector.load %arg4[%c0_15, %c0_16] : memref<179x90xf32, #tpu.memory_space<vmem>>, vector<179x90xf32>
    %cst_17 = arith.constant dense<0.000000e+00> : vector<30x90xf32>
    %25 = tpu.matmul %23, %24, %cst_17 {dimension_numbers = #tpu.dot_dimension_numbers<[1], [0], [0], [1], [0, 0, 1, 1], [], []>} : vector<30x179xf32>, vector<179x90xf32>, vector<30x90xf32> -> vector<30x90xf32>
    %26 = vector.extract_strided_slice %25 {offsets = [0, 0], sizes = [29, 90], strides = [1, 1]} : vector<30x90xf32> to vector<29x90xf32>
    %27 = vector.extract_strided_slice %25 {offsets = [1, 0], sizes = [29, 90], strides = [1, 1]} : vector<30x90xf32> to vector<29x90xf32>
    %28 = arith.maximumf %26, %27 : vector<29x90xf32>
    %c0_18 = arith.constant 0 : index
    %c0_19 = arith.constant 0 : index
    %29 = vector.load %arg5[%c0_18, %c0_19] : memref<15x29xf32, #tpu.memory_space<vmem>>, vector<15x29xf32>
    %cst_20 = arith.constant dense<0.000000e+00> : vector<15x90xf32>
    %30 = tpu.matmul %29, %28, %cst_20 {dimension_numbers = #tpu.dot_dimension_numbers<[1], [0], [0], [1], [0, 0, 1, 1], [], []>} : vector<15x29xf32>, vector<29x90xf32>, vector<15x90xf32> -> vector<15x90xf32>
    %31 = vector.extract_strided_slice %30 {offsets = [0, 0], sizes = [13, 90], strides = [1, 1]} : vector<15x90xf32> to vector<13x90xf32>
    %c0_21 = arith.constant 0 : index
    %c0_22 = arith.constant 0 : index
    %c0_23 = arith.constant 0 : index
    %32 = vector.load %arg6[%c0_21, %c0_22, %c0_23] : memref<3x90x208xf32, #tpu.memory_space<vmem>>, vector<1x90x208xf32>
    %33 = vector.shape_cast %32 : vector<1x90x208xf32> to vector<90x208xf32>
    %cst_24 = arith.constant dense<0.000000e+00> : vector<13x208xf32>
    %34 = tpu.matmul %31, %33, %cst_24 {dimension_numbers = #tpu.dot_dimension_numbers<[1], [0], [0], [1], [0, 0, 1, 1], [], []>} : vector<13x90xf32>, vector<90x208xf32>, vector<13x208xf32> -> vector<13x208xf32>
    %35 = vector.extract_strided_slice %30 {offsets = [1, 0], sizes = [13, 90], strides = [1, 1]} : vector<15x90xf32> to vector<13x90xf32>
    %c1_25 = arith.constant 1 : index
    %c0_26 = arith.constant 0 : index
    %c0_27 = arith.constant 0 : index
    %36 = vector.load %arg6[%c1_25, %c0_26, %c0_27] : memref<3x90x208xf32, #tpu.memory_space<vmem>>, vector<1x90x208xf32>
    %37 = vector.shape_cast %36 : vector<1x90x208xf32> to vector<90x208xf32>
    %cst_28 = arith.constant dense<0.000000e+00> : vector<13x208xf32>
    %38 = tpu.matmul %35, %37, %cst_28 {dimension_numbers = #tpu.dot_dimension_numbers<[1], [0], [0], [1], [0, 0, 1, 1], [], []>} : vector<13x90xf32>, vector<90x208xf32>, vector<13x208xf32> -> vector<13x208xf32>
    %39 = arith.addf %34, %38 : vector<13x208xf32>
    %40 = vector.extract_strided_slice %30 {offsets = [2, 0], sizes = [13, 90], strides = [1, 1]} : vector<15x90xf32> to vector<13x90xf32>
    %c2_29 = arith.constant 2 : index
    %c0_30 = arith.constant 0 : index
    %c0_31 = arith.constant 0 : index
    %41 = vector.load %arg6[%c2_29, %c0_30, %c0_31] : memref<3x90x208xf32, #tpu.memory_space<vmem>>, vector<1x90x208xf32>
    %42 = vector.shape_cast %41 : vector<1x90x208xf32> to vector<90x208xf32>
    %cst_32 = arith.constant dense<0.000000e+00> : vector<13x208xf32>
    %43 = tpu.matmul %40, %42, %cst_32 {dimension_numbers = #tpu.dot_dimension_numbers<[1], [0], [0], [1], [0, 0, 1, 1], [], []>} : vector<13x90xf32>, vector<90x208xf32>, vector<13x208xf32> -> vector<13x208xf32>
    %44 = arith.addf %39, %43 : vector<13x208xf32>
    %c0_33 = arith.constant 0 : index
    %c0_34 = arith.constant 0 : index
    %45 = vector.load %arg7[%c0_33, %c0_34] : memref<1x208xf32, #tpu.memory_space<vmem>>, vector<1x208xf32>
    %46 = vector.broadcast %45 : vector<1x208xf32> to vector<13x208xf32>
    %47 = arith.addf %44, %46 : vector<13x208xf32>
    %cst_35 = arith.constant 0.000000e+00 : f32
    %48 = vector.broadcast %cst_35 : f32 to vector<13x208xf32>
    %49 = arith.maximumf %47, %48 : vector<13x208xf32>
    %50 = vector.extract_strided_slice %49 {offsets = [0, 0], sizes = [13, 207], strides = [1, 1]} : vector<13x208xf32> to vector<13x207xf32>
    %51 = vector.extract_strided_slice %49 {offsets = [0, 1], sizes = [13, 207], strides = [1, 1]} : vector<13x208xf32> to vector<13x207xf32>
    %52 = arith.maximumf %50, %51 : vector<13x207xf32>
    %c0_36 = arith.constant 0 : index
    %c0_37 = arith.constant 0 : index
    %53 = vector.load %arg8[%c0_36, %c0_37] : memref<207x96xf32, #tpu.memory_space<vmem>>, vector<207x96xf32>
    %cst_38 = arith.constant dense<0.000000e+00> : vector<13x96xf32>
    %54 = tpu.matmul %52, %53, %cst_38 {dimension_numbers = #tpu.dot_dimension_numbers<[1], [0], [0], [1], [0, 0, 1, 1], [], []>} : vector<13x207xf32>, vector<207x96xf32>, vector<13x96xf32> -> vector<13x96xf32>
    %55 = vector.extract_strided_slice %54 {offsets = [0, 0], sizes = [12, 96], strides = [1, 1]} : vector<13x96xf32> to vector<12x96xf32>
    %56 = vector.extract_strided_slice %54 {offsets = [1, 0], sizes = [12, 96], strides = [1, 1]} : vector<13x96xf32> to vector<12x96xf32>
    %57 = arith.maximumf %55, %56 : vector<12x96xf32>
    %c0_39 = arith.constant 0 : index
    %c0_40 = arith.constant 0 : index
    %58 = vector.load %arg9[%c0_39, %c0_40] : memref<6x12xf32, #tpu.memory_space<vmem>>, vector<6x12xf32>
    %cst_41 = arith.constant dense<0.000000e+00> : vector<6x96xf32>
    %59 = tpu.matmul %58, %57, %cst_41 {dimension_numbers = #tpu.dot_dimension_numbers<[1], [0], [0], [1], [0, 0, 1, 1], [], []>} : vector<6x12xf32>, vector<12x96xf32>, vector<6x96xf32> -> vector<6x96xf32>
    %60 = vector.extract_strided_slice %59 {offsets = [0, 0], sizes = [1, 96], strides = [1, 1]} : vector<6x96xf32> to vector<1x96xf32>
    %c0_42 = arith.constant 0 : index
    %c0_43 = arith.constant 0 : index
    %c0_44 = arith.constant 0 : index
    %61 = vector.load %arg10[%c0_42, %c0_43, %c0_44] : memref<6x96x120xf32, #tpu.memory_space<vmem>>, vector<1x96x120xf32>
    %62 = vector.shape_cast %61 : vector<1x96x120xf32> to vector<96x120xf32>
    %cst_45 = arith.constant dense<0.000000e+00> : vector<1x120xf32>
    %63 = tpu.matmul %60, %62, %cst_45 {dimension_numbers = #tpu.dot_dimension_numbers<[1], [0], [0], [1], [0, 0, 1, 1], [], []>} : vector<1x96xf32>, vector<96x120xf32>, vector<1x120xf32> -> vector<1x120xf32>
    %64 = vector.extract_strided_slice %59 {offsets = [1, 0], sizes = [1, 96], strides = [1, 1]} : vector<6x96xf32> to vector<1x96xf32>
    %c1_46 = arith.constant 1 : index
    %c0_47 = arith.constant 0 : index
    %c0_48 = arith.constant 0 : index
    %65 = vector.load %arg10[%c1_46, %c0_47, %c0_48] : memref<6x96x120xf32, #tpu.memory_space<vmem>>, vector<1x96x120xf32>
    %66 = vector.shape_cast %65 : vector<1x96x120xf32> to vector<96x120xf32>
    %cst_49 = arith.constant dense<0.000000e+00> : vector<1x120xf32>
    %67 = tpu.matmul %64, %66, %cst_49 {dimension_numbers = #tpu.dot_dimension_numbers<[1], [0], [0], [1], [0, 0, 1, 1], [], []>} : vector<1x96xf32>, vector<96x120xf32>, vector<1x120xf32> -> vector<1x120xf32>
    %68 = arith.addf %63, %67 : vector<1x120xf32>
    %69 = vector.extract_strided_slice %59 {offsets = [2, 0], sizes = [1, 96], strides = [1, 1]} : vector<6x96xf32> to vector<1x96xf32>
    %c2_50 = arith.constant 2 : index
    %c0_51 = arith.constant 0 : index
    %c0_52 = arith.constant 0 : index
    %70 = vector.load %arg10[%c2_50, %c0_51, %c0_52] : memref<6x96x120xf32, #tpu.memory_space<vmem>>, vector<1x96x120xf32>
    %71 = vector.shape_cast %70 : vector<1x96x120xf32> to vector<96x120xf32>
    %cst_53 = arith.constant dense<0.000000e+00> : vector<1x120xf32>
    %72 = tpu.matmul %69, %71, %cst_53 {dimension_numbers = #tpu.dot_dimension_numbers<[1], [0], [0], [1], [0, 0, 1, 1], [], []>} : vector<1x96xf32>, vector<96x120xf32>, vector<1x120xf32> -> vector<1x120xf32>
    %73 = arith.addf %68, %72 : vector<1x120xf32>
    %74 = vector.extract_strided_slice %59 {offsets = [3, 0], sizes = [1, 96], strides = [1, 1]} : vector<6x96xf32> to vector<1x96xf32>
    %c3 = arith.constant 3 : index
    %c0_54 = arith.constant 0 : index
    %c0_55 = arith.constant 0 : index
    %75 = vector.load %arg10[%c3, %c0_54, %c0_55] : memref<6x96x120xf32, #tpu.memory_space<vmem>>, vector<1x96x120xf32>
    %76 = vector.shape_cast %75 : vector<1x96x120xf32> to vector<96x120xf32>
    %cst_56 = arith.constant dense<0.000000e+00> : vector<1x120xf32>
    %77 = tpu.matmul %74, %76, %cst_56 {dimension_numbers = #tpu.dot_dimension_numbers<[1], [0], [0], [1], [0, 0, 1, 1], [], []>} : vector<1x96xf32>, vector<96x120xf32>, vector<1x120xf32> -> vector<1x120xf32>
    %78 = arith.addf %73, %77 : vector<1x120xf32>
    %79 = vector.extract_strided_slice %59 {offsets = [4, 0], sizes = [1, 96], strides = [1, 1]} : vector<6x96xf32> to vector<1x96xf32>
    %c4 = arith.constant 4 : index
    %c0_57 = arith.constant 0 : index
    %c0_58 = arith.constant 0 : index
    %80 = vector.load %arg10[%c4, %c0_57, %c0_58] : memref<6x96x120xf32, #tpu.memory_space<vmem>>, vector<1x96x120xf32>
    %81 = vector.shape_cast %80 : vector<1x96x120xf32> to vector<96x120xf32>
    %cst_59 = arith.constant dense<0.000000e+00> : vector<1x120xf32>
    %82 = tpu.matmul %79, %81, %cst_59 {dimension_numbers = #tpu.dot_dimension_numbers<[1], [0], [0], [1], [0, 0, 1, 1], [], []>} : vector<1x96xf32>, vector<96x120xf32>, vector<1x120xf32> -> vector<1x120xf32>
    %83 = arith.addf %78, %82 : vector<1x120xf32>
    %84 = vector.extract_strided_slice %59 {offsets = [5, 0], sizes = [1, 96], strides = [1, 1]} : vector<6x96xf32> to vector<1x96xf32>
    %c5 = arith.constant 5 : index
    %c0_60 = arith.constant 0 : index
    %c0_61 = arith.constant 0 : index
    %85 = vector.load %arg10[%c5, %c0_60, %c0_61] : memref<6x96x120xf32, #tpu.memory_space<vmem>>, vector<1x96x120xf32>
    %86 = vector.shape_cast %85 : vector<1x96x120xf32> to vector<96x120xf32>
    %cst_62 = arith.constant dense<0.000000e+00> : vector<1x120xf32>
    %87 = tpu.matmul %84, %86, %cst_62 {dimension_numbers = #tpu.dot_dimension_numbers<[1], [0], [0], [1], [0, 0, 1, 1], [], []>} : vector<1x96xf32>, vector<96x120xf32>, vector<1x120xf32> -> vector<1x120xf32>
    %88 = arith.addf %83, %87 : vector<1x120xf32>
    %c0_63 = arith.constant 0 : index
    %c0_64 = arith.constant 0 : index
    %89 = vector.load %arg11[%c0_63, %c0_64] : memref<1x120xf32, #tpu.memory_space<vmem>>, vector<1x120xf32>
    %90 = arith.addf %88, %89 : vector<1x120xf32>
    %cst_65 = arith.constant 0.000000e+00 : f32
    %91 = vector.broadcast %cst_65 : f32 to vector<1x120xf32>
    %92 = arith.maximumf %90, %91 : vector<1x120xf32>
    %c0_66 = arith.constant 0 : index
    %c0_67 = arith.constant 0 : index
    %93 = vector.load %arg12[%c0_66, %c0_67] : memref<120x84xf32, #tpu.memory_space<vmem>>, vector<120x84xf32>
    %cst_68 = arith.constant dense<0.000000e+00> : vector<1x84xf32>
    %94 = tpu.matmul %92, %93, %cst_68 {dimension_numbers = #tpu.dot_dimension_numbers<[1], [0], [0], [1], [0, 0, 1, 1], [], []>} : vector<1x120xf32>, vector<120x84xf32>, vector<1x84xf32> -> vector<1x84xf32>
    %c0_69 = arith.constant 0 : index
    %c0_70 = arith.constant 0 : index
    %95 = vector.load %arg13[%c0_69, %c0_70] : memref<1x84xf32, #tpu.memory_space<vmem>>, vector<1x84xf32>
    %96 = arith.addf %94, %95 : vector<1x84xf32>
    %cst_71 = arith.constant 0.000000e+00 : f32
    %97 = vector.broadcast %cst_71 : f32 to vector<1x84xf32>
    %98 = arith.maximumf %96, %97 : vector<1x84xf32>
    %c0_72 = arith.constant 0 : index
    %c0_73 = arith.constant 0 : index
    %99 = vector.load %arg14[%c0_72, %c0_73] : memref<84x10xf32, #tpu.memory_space<vmem>>, vector<84x10xf32>
    %cst_74 = arith.constant dense<0.000000e+00> : vector<1x10xf32>
    %100 = tpu.matmul %98, %99, %cst_74 {dimension_numbers = #tpu.dot_dimension_numbers<[1], [0], [0], [1], [0, 0, 1, 1], [], []>} : vector<1x84xf32>, vector<84x10xf32>, vector<1x10xf32> -> vector<1x10xf32>
    %c0_75 = arith.constant 0 : index
    %c0_76 = arith.constant 0 : index
    %101 = vector.load %arg15[%c0_75, %c0_76] : memref<1x10xf32, #tpu.memory_space<vmem>>, vector<1x10xf32>
    %102 = arith.addf %100, %101 : vector<1x10xf32>
    %c0_77 = arith.constant 0 : index
    %c0_78 = arith.constant 0 : index
    %c0_79 = arith.constant 0 : index
    %103 = vector.load %arg16[%c0_77, %c0_78, %c0_79] : memref<1x1x10xf32, #tpu.memory_space<vmem>>, vector<1x1x10xf32>
    %104 = vector.shape_cast %103 : vector<1x1x10xf32> to vector<1x10xf32>
    %105 = vector.shape_cast %102 : vector<1x10xf32> to vector<1x1x10xf32>
    tpu.vector_store %arg16[%c0_77, %c0_78, %c0_79], %105 {strides = array<i32>} : memref<1x1x10xf32, #tpu.memory_space<vmem>>, vector<1x1x10xf32>,
    return
  }
  func.func @transform_0(%arg0: i32) -> (i32, i32, i32, i32) {
    %c0_i32 = arith.constant 0 : i32
    %c0_i32_0 = arith.constant 0 : i32
    %c0_i32_1 = arith.constant 0 : i32
    %c0_i32_2 = arith.constant 0 : i32
    return %arg0, %c0_i32, %c0_i32_0, %c0_i32_1 : i32, i32, i32, i32
  }
  func.func @transform_1(%arg0: i32) -> (i32, i32, i32) {
    %c0_i32 = arith.constant 0 : i32
    %c0_i32_0 = arith.constant 0 : i32
    %c0_i32_1 = arith.constant 0 : i32
    %c0_i32_2 = arith.constant 0 : i32
    return %c0_i32, %c0_i32_0, %c0_i32_1 : i32, i32, i32
  }
  func.func @transform_2(%arg0: i32) -> (i32, i32) {
    %c0_i32 = arith.constant 0 : i32
    %c0_i32_0 = arith.constant 0 : i32
    %c0_i32_1 = arith.constant 0 : i32
    return %c0_i32, %c0_i32_0 : i32, i32
  }
  func.func @transform_3(%arg0: i32) -> (i32, i32) {
    %c0_i32 = arith.constant 0 : i32
    %c0_i32_0 = arith.constant 0 : i32
    %c0_i32_1 = arith.constant 0 : i32
    return %c0_i32, %c0_i32_0 : i32, i32
  }
  func.func @transform_4(%arg0: i32) -> (i32, i32) {
    %c0_i32 = arith.constant 0 : i32
    %c0_i32_0 = arith.constant 0 : i32
    %c0_i32_1 = arith.constant 0 : i32
    return %c0_i32, %c0_i32_0 : i32, i32
  }
  func.func @transform_5(%arg0: i32) -> (i32, i32, i32) {
    %c0_i32 = arith.constant 0 : i32
    %c0_i32_0 = arith.constant 0 : i32
    %c0_i32_1 = arith.constant 0 : i32
    %c0_i32_2 = arith.constant 0 : i32
    return %c0_i32, %c0_i32_0, %c0_i32_1 : i32, i32, i32
  }
  func.func @transform_6(%arg0: i32) -> (i32, i32) {
    %c0_i32 = arith.constant 0 : i32
    %c0_i32_0 = arith.constant 0 : i32
    %c0_i32_1 = arith.constant 0 : i32
    return %c0_i32, %c0_i32_0 : i32, i32
  }
  func.func @transform_7(%arg0: i32) -> (i32, i32) {
    %c0_i32 = arith.constant 0 : i32
    %c0_i32_0 = arith.constant 0 : i32
    %c0_i32_1 = arith.constant 0 : i32
    return %c0_i32, %c0_i32_0 : i32, i32
  }
  func.func @transform_8(%arg0: i32) -> (i32, i32) {
    %c0_i32 = arith.constant 0 : i32
    %c0_i32_0 = arith.constant 0 : i32
    %c0_i32_1 = arith.constant 0 : i32
    return %c0_i32, %c0_i32_0 : i32, i32
  }
  func.func @transform_9(%arg0: i32) -> (i32, i32, i32) {
    %c0_i32 = arith.constant 0 : i32
    %c0_i32_0 = arith.constant 0 : i32
    %c0_i32_1 = arith.constant 0 : i32
    %c0_i32_2 = arith.constant 0 : i32
    return %c0_i32, %c0_i32_0, %c0_i32_1 : i32, i32, i32
  }
  func.func @transform_10(%arg0: i32) -> (i32, i32) {
    %c0_i32 = arith.constant 0 : i32
    %c0_i32_0 = arith.constant 0 : i32
    %c0_i32_1 = arith.constant 0 : i32
    return %c0_i32, %c0_i32_0 : i32, i32
  }
  func.func @transform_11(%arg0: i32) -> (i32, i32) {
    %c0_i32 = arith.constant 0 : i32
    %c0_i32_0 = arith.constant 0 : i32
    %c0_i32_1 = arith.constant 0 : i32
    return %c0_i32, %c0_i32_0 : i32, i32
  }
  func.func @transform_12(%arg0: i32) -> (i32, i32) {
    %c0_i32 = arith.constant 0 : i32
    %c0_i32_0 = arith.constant 0 : i32
    %c0_i32_1 = arith.constant 0 : i32
    return %c0_i32, %c0_i32_0 : i32, i32
  }
  func.func @transform_13(%arg0: i32) -> (i32, i32) {
    %c0_i32 = arith.constant 0 : i32
    %c0_i32_0 = arith.constant 0 : i32
    %c0_i32_1 = arith.constant 0 : i32
    return %c0_i32, %c0_i32_0 : i32, i32
  }
  func.func @transform_14(%arg0: i32) -> (i32, i32) {
    %c0_i32 = arith.constant 0 : i32
    %c0_i32_0 = arith.constant 0 : i32
    %c0_i32_1 = arith.constant 0 : i32
    return %c0_i32, %c0_i32_0 : i32, i32
  }
  func.func @transform_15(%arg0: i32) -> (i32, i32, i32) {
    %c0_i32 = arith.constant 0 : i32
    %c0_i32_0 = arith.constant 0 : i32
    %c0_i32_1 = arith.constant 0 : i32
    return %arg0, %c0_i32, %c0_i32_0 : i32, i32, i32
  }
}

</mosaic_0001>

<bundles_post_ra>
// kernel: net_forward.1
= control target key start
LH: loop header
LB: loop body
LE: loop exit
PB: predicated region body
PF: predicated region fallthrough
CT: control target
= control target key end

     0   :  { %s3244_s0 = inlined_call_operand.vmem [shape: f32[2,1,32,32], index: 0, kind: input, shape index: {}]   ;;  %s3245_s1 = inlined_call_operand.vmem [shape: f32[3,32,180], index: 1, kind: input, shape index: {}]   ;;  %s3246_s2 = inlined_call_operand.vmem [shape: f32[1,180], index: 2, kind: input, shape index: {}]   ;;  %s3247_s3 = inlined_call_operand.vmem [shape: f32[179,90], index: 3, kind: input, shape index: {}]   ;;  %s3248_s4 = inlined_call_operand.hbm [shape: f32[15,29], index: 4, kind: input, shape index: {}]   ;;  %s3249_s5 = inlined_call_operand.hbm [shape: f32[3,90,208], index: 5, kind: input, shape index: {}]   ;;  %s3250_s6 = inlined_call_operand.hbm [shape: f32[1,208], index: 6, kind: input, shape index: {}]   ;;  %s3251_s7 = inlined_call_operand.vmem [shape: f32[207,96], index: 7, kind: input, shape index: {}]   ;;  %s3252_s8 = inlined_call_operand.hbm [shape: f32[6,12], index: 8, kind: input, shape index: {}]   ;;  %s3253_s9 = inlined_call_operand.hbm [shape: f32[6,96,120], index: 9, kind: input, shape index: {}]   ;;  %s3254_s10 = inlined_call_operand.hbm [shape: f32[1,120], index: 10, kind: input, shape index: {}]   ;;  %s3255_s11 = inlined_call_operand.vmem [shape: f32[120,84], index: 11, kind: input, shape index: {}]   ;;  %s3256_s12 = inlined_call_operand.hbm [shape: f32[1,84], index: 12, kind: input, shape index: {}]   ;;  %s3257_s13 = inlined_call_operand.vmem [shape: f32[84,10], index: 13, kind: input, shape index: {}]   ;;  %s3258_s14 = inlined_call_operand.hbm [shape: f32[1,10], index: 14, kind: input, shape index: {}]   ;;  %s3259_s15 = inlined_call_operand.hbm [shape: f32[2,1,10], index: 15, kind: output, shape index: {}]  }
   0x1   :  { %3270 = sst [smem:[#allocation31_spill]] %s3249_s5 }
   0x2   :  { %3271 = sst [smem:[#allocation32_spill]] %s3252_s8 }
   0x3   :  { %3272 = sst [smem:[#allocation33_spill]] %s3259_s15 }
   0x4   :  { %20 = vsyncpa [#allocation3], 0 }
   0x5   :  { %21 = vsyncpa [#allocation6], 0 }
   0x6   :  { %22 = vsyncpa [#allocation9], 0 }
   0x7   :  { %23 = vsyncpa [#allocation12], 0 }
   0x8   :  { %24 = vsyncpa [#allocation15], 0 }
   0x9   :  { %25 = vsyncpa [#allocation4], 0 }
   0xa   :  { %27 = vsyncpa [#allocation4 + $0x1], 0  ;;  %s2607_s18 = smov 0   ;;  %s2609_s19 = smov 0  }
   0xb   :  { %s2611_s20 = smov 0   ;;  %s2613_s21 = smov 0  }
   0xc LB: > { %3273 = sst [smem:[#allocation23_spill]] %s2500_s18  ;;  %s2628_s22 = sadd.s32 4294967295, %s2512_s21   ;;  %s2512_s21 = sphi %s2613_s21, %s3293_s21   ;;  %s2508_s20 = sphi %s2611_s20, %s3296_s20   ;;  %s2504_s19 = sphi %s2609_s19, %s3295_s19   ;;  %s2500_s18 = sphi %s2607_s18, %s3294_s18  }
   0xd   : > { %3274 = sst [smem:[#allocation24_spill]] %s2504_s19  ;;  %s1956_s23 = sadd.s32 4294967294, %s2512_s21  }
   0xe   : > { %3275 = sst [smem:[#allocation25_spill]] %s2508_s20  ;;  %s2632_s24 = sadd.s32 1, %s2512_s21  }
   0xf   : > { %3276 = sst [smem:[#allocation26_spill]] %s2512_s21  ;;  %s360_s25 = sadd.s32 1, %s2508_s20 }
  0x10   : > { %3277 = sst [smem:[#allocation27_spill]] %s2632_s24  ;;  %s357_s26 = ssub.s32 %s2512_s21, %s2632_s24 }
  0x11   : > { %p370_p0 = scmp.ne.s32.totalorder %s2508_s20, %s2504_s19  ;;  %p358_p1 = scmp.eq.s32.totalorder %s357_s26, 0 }
  0x12   : > { %p371_p2 = scmp.eq.s32.totalorder %s2628_s22, 1  ;;  %p376_p3 = scmp.ne.s32.totalorder %s2504_s19, %s2500_s18 }
  0x13   : > { %p377_p4 = scmp.eq.s32.totalorder %s1956_s23, 1  ;;  %p1957_p7 = scmp.ge.s32.totalorder %s2512_s21, 1 }
  0x14   : > { %s2643_s27 = scalar_select %p358_p1, %s2508_s20, %s360_s25  }
  0x15   : > { %p2645_p5 = por %p371_p2, %p370_p0  ;;  %p2649_p6 = por %p377_p4, %p376_p3 }
  0x16   : > { %3278 = sst [smem:[#allocation28_spill]] %s2643_s27  ;;  %p384_p8 = scmp.lt.s32.totalorder %s2512_s21, 3 }
  0x17   : > { %s3279_s28 = scalar_select %p2645_p5, 1, 0 }
  0x18   : > { %s3281_s29 = scalar_select %p2649_p6, 1, 0 }
  0x19   : > { %3280 = sst [smem:[#allocation29_spill]] %s3279_s28  ;;  %p2128_p9 = scmp.eq.s32.totalorder %s2628_s22, 0 }
  0x1a   : > { %3282 = sst [smem:[#allocation30_spill]] %s3281_s29  ;;  %p2656_p10 = pnand %p1957_p7, %p384_p8 }
  0x1b   : > { %s3284_s5 = sld [smem:[#allocation31_spill]]  ;;  %s2514_s25 = smov [#allocation5]  }
  0x1c   : > { %p2099_p11 = pneg %p2656_p10  ;;  %s420_s26 = sshll.u32 %s2514_s25, 4  ;;  %s421_s26 = int_to_ptr.vmem [resolvable:$true] %s420_s26 }
  0x1d   : > { %s3286_s8 = sld [smem:[#allocation32_spill]]  ;;  %s2515_s16 = smov 256  }
  0x1e   : > { %p2667_p12 = pnand %p2128_p9, %p2099_p11  ;;  %s2516_s17 = smov 16  }
  0x1f   : > { %s474_s28 = sshll.u32 %s3254_s10, 4  ;;  %s2518_s15 = smov [#allocation11]   ;;  %s475_s28 = int_to_ptr.hbm [resolvable:$true] %s474_s28 }
  0x20   : > { %s476_s19 = sshll.u32 %s2518_s15, 4  ;;  %s2520_s18 = smov 128   ;;  %s477_s19 = int_to_ptr.vmem [resolvable:$true] %s476_s19 }
  0x21   : > { %s418_s23 = sshll.u32 %s3284_s5, 4  ;;  %s2517_s5 = smov [#allocation8]   ;;  %s419_s23 = int_to_ptr.hbm [resolvable:$true] %s418_s23 }
  0x22   : > { %2105 = dma.hbm_to_vmem [thread:$0]  (!%p2667_p12), %s419_s23, 9216, %s421_s26, [#allocation6], %s2515_s16, %s2515_s16, %s2516_s17  }
  0x23   : > { %s448_s29 = sshll.u32 %s3286_s8, 4  ;;  %s450_s25 = sshll.u32 %s2517_s5, 4  ;;  %s449_s29 = int_to_ptr.hbm [resolvable:$true] %s448_s29  ;;  %s451_s25 = int_to_ptr.vmem [resolvable:$true] %s450_s25 }
  0x24   : > { %2111 = dma.hbm_to_vmem [thread:$0]  (!%p2667_p12), %s449_s29, 128, %s451_s25, [#allocation9]  }
  0x25   : > { %s404_s8 = sshll.u32 %s3248_s4, 4  ;;  %s2519_s5 = smov [#allocation2]   ;;  %s405_s8 = int_to_ptr.hbm [resolvable:$true] %s404_s8 }
  0x26   : > { %2117 = dma.hbm_to_vmem [thread:$0]  (!%p2667_p12), %s475_s28, 16, %s477_s19, [#allocation12]  }
  0x27   : > { %s406_s23 = sshll.u32 %s2519_s5, 4  ;;  %s2521_s21 = smov 8   ;;  %s407_s23 = int_to_ptr.vmem [resolvable:$true] %s406_s23 }
  0x28   : > { %2102 = dma.hbm_to_vmem [thread:$0]  (!%p2667_p12), %s405_s8, 256, %s407_s23, [#allocation3], %s2520_s18, %s2520_s18, %s2521_s21  }
  0x29   : > { %s433_s16 = sshll.u32 %s3250_s6, 4  ;;  %s2522_s17 = smov [#allocation7]   ;;  %s434_s16 = int_to_ptr.hbm [resolvable:$true] %s433_s16 }
  0x2a   : > { %s435_s15 = sshll.u32 %s2522_s17, 4  ;;  %s459_s19 = sshll.u32 %s3253_s9, 4  ;;  %s436_s15 = int_to_ptr.vmem [resolvable:$true] %s435_s15  ;;  %s460_s19 = int_to_ptr.hbm [resolvable:$true] %s459_s19 }
  0x2b   : > { %2108 = dma.hbm_to_vmem [thread:$0]  (!%p2667_p12), %s434_s16, 32, %s436_s15, [#allocation6]  }
  0x2c   : > { %s2523_s28 = smov [#allocation10]   ;;  %s489_s23 = sshll.u32 %s3256_s12, 4  ;;  %s490_s23 = int_to_ptr.hbm [resolvable:$true] %s489_s23 }
  0x2d   : > { %s461_s24 = sshll.u32 %s2523_s28, 4  ;;  %s504_s17 = sshll.u32 %s3258_s14, 4  ;;  %s462_s24 = int_to_ptr.vmem [resolvable:$true] %s461_s24  ;;  %s505_s17 = int_to_ptr.hbm [resolvable:$true] %s504_s17 }
  0x2e   : > { %2114 = dma.hbm_to_vmem [thread:$0]  (!%p2667_p12), %s460_s19, 9216, %s462_s24, [#allocation9], %s2520_s18, %s2520_s18, %s2521_s21  }
  0x2f   : > { %s2524_s25 = smov [#allocation13]   ;;  %s2525_s16 = smov [#allocation14]  }
  0x30   : > { %s491_s20 = sshll.u32 %s2524_s25, 4  ;;  %s506_s15 = sshll.u32 %s2525_s16, 4  ;;  %s492_s20 = int_to_ptr.vmem [resolvable:$true] %s491_s20  ;;  %s507_s15 = int_to_ptr.vmem [resolvable:$true] %s506_s15 }
  0x31   : > { %2120 = dma.hbm_to_vmem [thread:$0]  (!%p2667_p12), %s490_s23, 16, %s492_s20, [#allocation12]  }
  0x32   : > { %2123 = dma.hbm_to_vmem [thread:$0]  (!%p2667_p12), %s505_s17, 16, %s507_s15, [#allocation15]  }
  0x33   : > { %527 = sbr.rel (%p2656_p10) target bundleno = 1629 (0x65d), region = 80 }
  0x38   : > { %2475 = dma.done.wait (%p2128_p9), [#allocation3], 256  }
  0x39   : > { %2477 = vsyncadd (%p2128_p9), [#allocation3], 4294967040 }
  0x3a   : > { %2479 = dma.done.wait (%p2128_p9), [#allocation6], 9248  }
  0x3b   : > { %2481 = vsyncadd (%p2128_p9), [#allocation6], 4294958048 }
  0x3c   : > { %2483 = dma.done.wait (%p2128_p9), [#allocation9], 9344  }
  0x3d   : > { %2485 = vsyncadd (%p2128_p9), [#allocation9], 4294957952 }
  0x3e   : > { %2487 = dma.done.wait (%p2128_p9), [#allocation12], 32  }
  0x3f   : > { %2489 = vsyncadd (%p2128_p9), [#allocation12], 4294967264 }
  0x40   : > { %2491 = dma.done.wait (%p2128_p9), [#allocation15], 16  }
  0x41   : > { %2493 = vsyncadd (%p2128_p9), [#allocation15], 4294967280  ;;  %p610_p13 = scmp.lt.s32.totalorder %s2628_s22, 1  ;;  %v1984_v0 = vld [vmem:[%s3245_s1 + $0x70] sm:$0xff]  ;;  %v1985_v1 = vld [vmem:[%s3245_s1 + $0x78] sm:$0xff]  ;;  %vm640_vm0 = vcmask 1046528  }
  0x42   : > { %v626_v2 = vld [vmem:[%s3245_s1 + $0x38] sm:$0xff]  ;;  %669 = vmatpush.msra.mxu0 %v1984_v0  ;;  %698 = vmatpush.msra.mxu1 %v1985_v1  ;;  %v1982_v3 = vld [vmem:[%s3245_s1 + $0x60] sm:$0xff]  ;;  %v1983_v4 = vld [vmem:[%s3245_s1 + $0x68] sm:$0xff]  ;;  %vm648_vm1 = vcmask 261120   ;;  %vm790_vm2 = vcmask 1045504   ;;  %s2526_s20 = smov 127  }
  0x43   : > { %s611_s27 = scalar_select %p610_p13, %s2628_s22, 1  ;;  %v624_v5 = vld [vmem:[%s3245_s1 + $0x28] sm:$0xff]  ;;  %2061 = vmatpush.msra.mxu2 %v1985_v1  ;;  %764 = vmatpush.msra.mxu3 %v626_v2  ;;  %v1980_v6 = vld [vmem:[%s3245_s1 + $0x50] sm:$0xff]  ;;  %v1981_v7 = vld [vmem:[%s3245_s1 + $0x58] sm:$0xff]  ;;  %vm975_vm3 = vcmask 1042432   ;;  %vm918_vm4 = vcmask 1039360  }
  0x44   : > { %670 = vmatpush.msra.mxu0 %v1982_v3  ;;  %699 = vmatpush.msra.mxu1 %v1983_v4  ;;  %v622_v8 = vld [vmem:[%s3245_s1 + $0x18] sm:$0xff]  ;;  %v1978_v9 = vld [vmem:[%s3245_s1 + $0x40] sm:$0xff]  ;;  %v1979_v10 = vld [vmem:[%s3245_s1 + $0x48] sm:$0xff]  ;;  %vm962_vm5 = vcmask 416768   ;;  %vm1151_vm6 = vcmask 1041408   ;;  %vm1065_vm7 = vcmask 1044480  }
  0x45   : > { %s2060_s30 = sshll.u32 %s611_s27, 5  ;;  %2062 = vmatpush.msra.mxu2 %v1983_v4  ;;  %765 = vmatpush.msra.mxu3 %v624_v5  ;;  %v620_v14 = vld [vmem:[%s3245_s1 + $0x8] sm:$0xff]  ;;  %v625_v20 = vld [vmem:[%s3245_s1 + $0x30] sm:$0xff]  ;;  %v2009_v21 = vld [vmem:[%s3245_s1 + $0xb8] sm:$0xff]  ;;  %vm1058_vm8 = vcmask 236544   ;;  %vm1146_vm9 = vcmask 736256  }
  0x46   : > { %s614_s15 = scalar_lea.vmem %s3244_s0, %s2060_s30  ;;  %671 = vmatpush.msra.mxu0 %v1980_v6  ;;  %700 = vmatpush.msra.mxu1 %v1981_v7  ;;  %v2008_v22 = vld [vmem:[%s3245_s1 + $0xb0] sm:$0xff]  ;;  %v623_v23 = vld [vmem:[%s3245_s1 + $0x20] sm:$0xff]  ;;  %v2007_v25 = vld [vmem:[%s3245_s1 + $0xa8] sm:$0xff]  ;;  %vm1410_vm10 = vcmask 646144   ;;  %vm1480_vm11 = vcmask 1043456   ;;  %vm1476_vm12 = vcmask 97280  }
  0x47   : > { %v2768_v11 = vld [vmem:[%s614_s15] sm:$0xff]  ;;  %v2770_v12 = vld [vmem:[%s614_s15 + $0x8] sm:$0xff]  ;;  %v2772_v13 = vld [vmem:[%s614_s15 + $0x18] sm:$0xff]  ;;  %2063 = vmatpush.msra.mxu2 %v1981_v7  ;;  %766 = vmatpush.msra.mxu3 %v622_v8  ;;  %vm1531_vm13 = vcmask 785408   ;;  %s3287_s16 = sld [smem:[#allocation24_spill]]  ;;  %vm1743_vm14 = vcmask 982016  }
  0x48   : > { %v641_v15 = vrot.slane %v2768_v11, 1  ;;  %v642_v16 = vrot.slane %v2770_v12, 1  ;;  %v646_v17 = vrot.slane %v2772_v13, 1  ;;  %672 = vmatpush.msra.mxu0 %v1978_v9  ;;  %701 = vmatpush.msra.mxu1 %v1979_v10  ;;  %v617_v19 = vld [vmem:[%s614_s15 + $0x10] sm:$0xff]  ;;  %v2006_v26 = vld [vmem:[%s3245_s1 + $0xa0] sm:$0xff]  ;;  %v2005_v28 = vld [vmem:[%s3245_s1 + $0x98] sm:$0xff] }
  0x49   : > { %2064 = vmatpush.msra.mxu2 %v1979_v10  ;;  %767 = vmatpush.msra.mxu3 %v620_v14  ;;  %v644_v24 = vrot.slane %v617_v19, 1  ;;  %v621_v27 = vld [vmem:[%s3245_s1 + $0x10] sm:$0xff]  ;;  %v619_v30 = vld [vmem:[%s3245_s1] sm:$0xff]  ;;  %v2003_v32 = vld [vmem:[%s3245_s1 + $0x88] sm:$0xff]  ;;  %v791_v35 = vrot.slane %v2768_v11, 2  ;;  %v792_v36 = vrot.slane %v2770_v12, 2 }
  0x4a   : > { %v643_v18 = vsel %vm640_vm0, %v641_v15, %v642_v16  ;;  %1993 = vmatmul.msk.f32.vlgmr.msra.gmra.mxu2 %vm648_vm1, %v646_v17  ;;  %1998 = vmatmul.msk.f32.vlgmr.msra.gmra.mxu3 %vm648_vm1, %v2768_v11  ;;  %v2004_v29 = vld [vmem:[%s3245_s1 + $0x90] sm:$0xff]  ;;  %v2002_v33 = vld [vmem:[%s3245_s1 + $0x80] sm:$0xff]  ;;  %v794_v38 = vrot.slane %v617_v19, 2  ;;  %v796_v40 = vrot.slane %v2772_v13, 2  ;;  %v954_v59 = vld [vmem:[%s3247_s3 + $0x78] sm:$0xff]  ;;  %vm1780_vm15 = vcmask 687104  }
  0x4b   : > { %1986 = vmatmul.msk.f32.vlgmr.msra.gmra.mxu0 %vm648_vm1, %v643_v18  ;;  %1990 = vmatmul.msk.f32.vlgmr.msra.gmra.mxu1 %vm648_vm1, %v643_v18  ;;  %v645_v31 = vsel %vm640_vm0, %v642_v16, %v644_v24  ;;  %v647_v34 = vsel %vm640_vm0, %v644_v24, %v646_v17  ;;  %v793_v37 = vsel %vm790_vm2, %v791_v35, %v792_v36  ;;  %v872_v54 = vld [vmem:[%s3246_s2] sm:$0x3]  ;;  %v953_v60 = vld [vmem:[%s3247_s3 + $0x70] sm:$0xff]  ;;  %v952_v63 = vld [vmem:[%s3247_s3 + $0x68] sm:$0xff]  ;;  %s3288_s30 = sld [smem:[#allocation33_spill]] }
  0x4c   : > { %735 = vmatpush.msrb.mxu2 %v625_v20  ;;  %847 = vmatpush.msrb.mxu1 %v2009_v21  ;;  %v795_v39 = vsel %vm790_vm2, %v792_v36, %v794_v38  ;;  %v797_v41 = vsel %vm790_vm2, %v794_v38, %v796_v40  ;;  %v874_v56 = vperm.slane %v872_v54, 0  ;;  %v951_v2 = vld [vmem:[%s3247_s3 + $0x60] sm:$0xff]  ;;  %v875_v4 = vperm.slane %v872_v54, 1  ;;  %v950_v7 = vld [vmem:[%s3247_s3 + $0x58] sm:$0xff]  ;;  %v949_v10 = vld [vmem:[%s3247_s3 + $0x50] sm:$0xff] }
  0x4d   : > { %818 = vmatpush.msrb.mxu0 %v2008_v22  ;;  %v957_v54 = vld [vmem:[%s3247_s3 + $0x90] sm:$0xff]  ;;  %s608_s24 = sand.u32 1, %s3287_s16  }
  0x4e   : > { %736 = vmatpush.msrb.mxu2 %v623_v23  ;;  %848 = vmatpush.msrb.mxu1 %v2007_v25  ;;  %s609_s29 = scalar_lea.vmem [#allocation16], %s608_s24  ;;  %s1810_s25 = scalar_lea.sflag [#allocation4], %s608_s24 }
  0x4f   : > { %819 = vmatpush.msrb.mxu0 %v2006_v26  ;;  %s1820_s26 = sshll.u32 %s609_s29, 4  ;;  %s1821_s26 = int_to_ptr.vmem [resolvable:$true] %s1820_s26 }
  0x50   : > { %737 = vmatpush.msrb.mxu2 %v621_v27  ;;  %849 = vmatpush.msrb.mxu1 %v2005_v28 }
  0x51   : > { %820 = vmatpush.msrb.mxu0 %v2004_v29  ;;  %s1818_s23 = scalar_lea.hbm %s3288_s30, %s2628_s22  ;;  %s2450_s15 = scalar_lea.hbm %s3288_s30, 2 }
  0x52   : > { %738 = vmatpush.msrb.mxu2 %v619_v30  ;;  %1999 = vmatmul.msk.f32.gmra.mxu3 %vm648_vm1, %v2770_v12  ;;  %s1822_s17 = sshll.u32 %s1818_s23, 4  ;;  %s1823_s17 = int_to_ptr.hbm [resolvable:$true] %s1822_s17 }
  0x53   : > { %1987 = vmatmul.msk.f32.gmra.mxu0 %vm648_vm1, %v645_v31  ;;  %1991 = vmatmul.msk.f32.gmra.mxu1 %vm648_vm1, %v645_v31  ;;  %s2444_s27 = sshra.s32 %s1823_s17, 4  ;;  %s2445_s27 = int_to_ptr.hbm [resolvable:$true] %s2444_s27 }
  0x54   : > { %1994 = vmatmul.msk.f32.vlgmr.msrb.gmra.mxu2 %vm648_vm1, %v2768_v11  ;;  %850 = vmatpush.msrb.mxu1 %v2003_v32  ;;  %s2446_s18 = scalar_lea.hbm %s2445_s27, 1  ;;  %p2451_p3 = scmp.lt.s32.totalorder %s2445_s27, %s3288_s30 }
  0x55   : > { %821 = vmatpush.msrb.mxu0 %v2002_v33  ;;  %979 = vmatpush.msra.mxu2 %v954_v59  ;;  %v939_v59 = vld [vmem:[%s3247_s3] sm:$0xff]  ;;  %p2447_p0 = scmp.ne.s32.totalorder %s2445_s27, %s2446_s18  ;;  %p2452_p4 = scmp.lt.s32.totalorder %s2450_s15, %s2446_s18 }
  0x57   : > { %980 = vmatpush.msra.mxu2 %v953_v60  ;;  %p2448_p1 = pnand %p2447_p0, %p2645_p5  ;;  %p2453_p7 = por %p2452_p4, %p2451_p3 }
  0x59   : > { %981 = vmatpush.msra.mxu2 %v952_v63  ;;  %p2449_p2 = pneg %p2448_p1 }
  0x5a   : > { %2000 = vmatmul.msk.f32.gmra.mxu3 %vm648_vm1, %v617_v19 }
  0x5b   : > { %1988 = vmatmul.msk.f32.gmra.mxu0 %vm648_vm1, %v647_v34  ;;  %1992 = vmatmul.msk.f32.gmra.mxu1 %vm648_vm1, %v647_v34  ;;  %p2454_p8 = pnand %p2453_p7, %p2449_p2 }
  0x5c   : > { %1995 = vmatmul.msk.f32.gmra.mxu2 %vm648_vm1, %v2770_v12 }
  0x5d   : > { %982 = vmatpush.msra.mxu2 %v951_v2 }
  0x5f   : > { %983 = vmatpush.msra.mxu2 %v950_v7 }
  0x61   : > { %984 = vmatpush.msra.mxu2 %v949_v10 }
  0x62   : > { %2001 = vmatmul.msk.f32.gmra.mxu3 %vm648_vm1, %v2772_v13 }
  0x63   : > { %1989 = vmatmul.msk.f32.gmra.mxu0 %vm648_vm1, %v646_v17  ;;  %2014 = vmatmul.msk.f32.vlgmr.msrb.gmra.mxu1 %vm648_vm1, %v793_v37 }
  0x64   : > { %1996 = vmatmul.msk.f32.gmra.mxu2 %vm648_vm1, %v617_v19 }
  0x6b   : > { %2010 = vmatmul.msk.f32.vlgmr.msrb.gmra.mxu0 %vm648_vm1, %v793_v37  ;;  %2015 = vmatmul.msk.f32.gmra.mxu1 %vm648_vm1, %v795_v39 }
  0x6c   : > { %1997 = vmatmul.msk.f32.gmra.mxu2 %vm648_vm1, %v2772_v13 }
  0x73   : > { %2011 = vmatmul.msk.f32.gmra.mxu0 %vm648_vm1, %v795_v39  ;;  %2016 = vmatmul.msk.f32.gmra.mxu1 %vm648_vm1, %v797_v41 }
  0x7b   : > { %2012 = vmatmul.msk.f32.gmra.mxu0 %vm648_vm1, %v797_v41  ;;  %2017 = vmatmul.msk.f32.gmra.mxu1 %vm648_vm1, %v796_v40 }
  0x83   : > { %2013 = vmatmul.msk.f32.gmra.mxu0 %vm648_vm1, %v796_v40 }
  0xc8   : > { %v674_v42 = vpop.f32.mrf.mxu0  ;;  %v703_v43 = vpop.f32.mrf.mxu1 }
  0xcd   : > { %v712_v46 = vpop.f32.mrf.mxu2  ;;  %v769_v49 = vpop.f32.mrf.mxu3 }
  0xce   : > { %v770_v0 = vadd.f32 %v769_v49, %v703_v43  ;;  %v948_v43 = vld [vmem:[%s3247_s3 + $0x48] sm:$0xff] }
  0xcf   : > { %985 = vmatpush.msra.mxu2 %v948_v43  ;;  %v944_v49 = vld [vmem:[%s3247_s3 + $0x28] sm:$0xff]  ;;  %v1127_v43 = vld [vmem:[#allocation5 + $0x110] sm:$0xff] }
  0xd0   : > { %v677_v44 = vpop.f32.mrf.mxu0  ;;  %v706_v45 = vpop.f32.mrf.mxu1 }
  0xd5   : > { %v772_v53 = vpop.f32.mrf.mxu3 }
  0xd6   : > { %v773_v15 = vadd.f32 %v772_v53, %v706_v45  ;;  %v961_v45 = vld [vmem:[%s3247_s3 + $0xb0] sm:$0x7]  ;;  %v942_v53 = vld [vmem:[%s3247_s3 + $0x18] sm:$0xff] }
  0xd7   : > { %v740_v50 = vpop.f32.mrf.mxu2  ;;  %2018 = vmatpush.msk.msrb.mxu3 %vm975_vm3, %v961_v45 }
  0xd8   : > { %v680_v47 = vpop.f32.mrf.mxu0  ;;  %v709_v48 = vpop.f32.mrf.mxu1  ;;  %v741_v55 = vadd.f32 %v740_v50, %v674_v42  ;;  %v959_v50 = vld [vmem:[%s3247_s3 + $0xa0] sm:$0xff] }
  0xdd   : > { %v775_v6 = vpop.f32.mrf.mxu3 }
  0xde   : > { %v776_v26 = vadd.f32 %v775_v6, %v709_v48  ;;  %v945_v48 = vld [vmem:[%s3247_s3 + $0x30] sm:$0xff] }
  0xdf   : > { %v743_v57 = vpop.f32.mrf.mxu2 }
  0xe0   : > { %v683_v51 = vpop.f32.mrf.mxu0  ;;  %v852_v52 = vpop.f32.mrf.mxu1  ;;  %v744_v8 = vadd.f32 %v743_v57, %v677_v44  ;;  %v947_v44 = vld [vmem:[%s3247_s3 + $0x40] sm:$0xff]  ;;  %v940_v57 = vld [vmem:[%s3247_s3 + $0x8] sm:$0xff] }
  0xe1   : > { %v865_v3 = vadd.f32 %v852_v52, %v770_v0  ;;  %986 = vmatpush.msra.mxu2 %v947_v44  ;;  %v958_v52 = vld [vmem:[%s3247_s3 + $0x98] sm:$0xff]  ;;  %v1128_v44 = vld [vmem:[#allocation5 + $0x118] sm:$0xff] }
  0xe3   : > { %v2882_v11 = vadd.f32 %v875_v4, %v865_v3 }
  0xe5   : > { %v887_v17 = vmax.f32 %v2882_v11, 0.0  ;;  %v778_v21 = vpop.f32.mrf.mxu3 }
  0xe6   : > { %v779_v27 = vadd.f32 %v778_v21, %v712_v46  ;;  %v960_v46 = vld [vmem:[%s3247_s3 + $0xa8] sm:$0xff] }
  0xe7   : > { %v746_v14 = vpop.f32.mrf.mxu2  ;;  %1018 = vmatpush.msrb.mxu3 %v960_v46  ;;  %v1140_v21 = vld [vmem:[#allocation5 + $0x178] sm:$0x3]  ;;  %v1104_v46 = vld [vmem:[#allocation5 + $0x60] sm:$0xff] }
  0xe8   : > { %v823_v58 = vpop.f32.mrf.mxu0  ;;  %v855_v62 = vpop.f32.mrf.mxu1  ;;  %v747_v20 = vadd.f32 %v746_v14, %v680_v47  ;;  %v946_v47 = vld [vmem:[%s3247_s3 + $0x38] sm:$0xff] }
  0xe9   : > { %v864_v61 = vadd.f32 %v823_v58, %v741_v55  ;;  %v867_v18 = vadd.f32 %v855_v62, %v773_v15  ;;  %987 = vmatpush.msra.mxu2 %v946_v47  ;;  %1019 = vmatpush.msrb.mxu3 %v959_v50  ;;  %v941_v55 = vld [vmem:[%s3247_s3 + $0x10] sm:$0xff]  ;;  %v955_v58 = vld [vmem:[%s3247_s3 + $0x80] sm:$0xff]  ;;  %v1126_v50 = vld [vmem:[#allocation5 + $0x108] sm:$0xff] }
  0xeb   : > { %v2867_v1 = vadd.f32 %v874_v56, %v864_v61  ;;  %v2894_v23 = vadd.f32 %v875_v4, %v867_v18  ;;  %988 = vmatpush.msra.mxu2 %v945_v48  ;;  %1020 = vmatpush.msrb.mxu3 %v958_v52  ;;  %v1102_v52 = vld [vmem:[#allocation5 + $0x50] sm:$0xff] }
  0xed   : > { %v886_v5 = vmax.f32 %v2867_v1, 0.0  ;;  %v889_v30 = vmax.f32 %v2894_v23, 0.0  ;;  %989 = vmatpush.msra.mxu2 %v944_v49  ;;  %1021 = vmatpush.msrb.mxu3 %v957_v54  ;;  %v1125_v49 = vld [vmem:[#allocation5 + $0x100] sm:$0xff]  ;;  %v1123_v54 = vld [vmem:[#allocation5 + $0xf0] sm:$0xff] }
  0xef   : > { %902 = vrot.lane.b32.xlu0 %v886_v5, %s2526_s20  ;;  %v749_v29 = vpop.f32.mrf.mxu2 }
  0xf0   : > { %v826_v9 = vpop.f32.mrf.mxu0  ;;  %v858_v13 = vpop.f32.mrf.mxu1  ;;  %v750_v34 = vadd.f32 %v749_v29, %v683_v51  ;;  %v943_v51 = vld [vmem:[%s3247_s3 + $0x20] sm:$0xff]  ;;  %v1112_v29 = vld [vmem:[#allocation5 + $0xa0] sm:$0xff] }
  0xf1   : > { %v866_v12 = vadd.f32 %v826_v9, %v744_v8  ;;  %v869_v31 = vadd.f32 %v858_v13, %v776_v26  ;;  %990 = vmatpush.msra.mxu2 %v943_v51  ;;  %v1135_v26 = vld [vmem:[#allocation5 + $0x150] sm:$0xff] }
  0xf3   : > { %v2884_v16 = vadd.f32 %v874_v56, %v866_v12  ;;  %v2906_v36 = vadd.f32 %v875_v4, %v869_v31  ;;  %991 = vmatpush.msra.mxu2 %v942_v53  ;;  %v1134_v31 = vld [vmem:[#allocation5 + $0x148] sm:$0xff] }
  0xf5   : > { %v888_v19 = vmax.f32 %v2884_v16, 0.0  ;;  %v891_v40 = vmax.f32 %v2906_v36, 0.0  ;;  %992 = vmatpush.msra.mxu2 %v941_v55 }
  0xf7   : > { %904 = vrot.lane.b32.xlu0 %v887_v17, %s2526_s20  ;;  %906 = vrot.lane.b32.xlu1 %v888_v19, %s2526_s20 }
  0xf8   : > { %v829_v22 = vpop.f32.mrf.mxu0  ;;  %v861_v25 = vpop.f32.mrf.mxu1  ;;  %993 = vmatpush.msra.mxu2 %v940_v57  ;;  %v1124_v57 = vld [vmem:[#allocation5 + $0xf8] sm:$0xff] }
  0xf9   : > { %v868_v24 = vadd.f32 %v829_v22, %v747_v20  ;;  %v871_v32 = vadd.f32 %v861_v25, %v779_v27  ;;  %v1139_v20 = vld [vmem:[#allocation5 + $0x170] sm:$0x3]  ;;  %v1137_v22 = vld [vmem:[#allocation5 + $0x160] sm:$0xff]  ;;  %v1136_v27 = vld [vmem:[#allocation5 + $0x158] sm:$0xff] }
  0xfa   : > { %994 = vmatpush.msra.mxu2 %v939_v59  ;;  %2026 = vmatpush.msk.msra.mxu1 %vm1151_vm6, %v1139_v20  ;;  %v1120_v20 = vld [vmem:[#allocation5 + $0xd8] sm:$0xff] }
  0xfb   : > { %v2896_v28 = vadd.f32 %v874_v56, %v868_v24  ;;  %v2908_v37 = vadd.f32 %v875_v4, %v871_v32  ;;  %v1138_v24 = vld [vmem:[#allocation5 + $0x168] sm:$0xff]  ;;  %v1110_v32 = vld [vmem:[#allocation5 + $0x90] sm:$0xff] }
  0xfc   : > { %2029 = vmatpush.msk.msrb.mxu2 %vm1151_vm6, %v1140_v21  ;;  %1163 = vmatpush.msra.mxu1 %v1137_v22  ;;  %v1117_v21 = vld [vmem:[#allocation5 + $0xc0] sm:$0xff]  ;;  %v1118_v22 = vld [vmem:[#allocation5 + $0xc8] sm:$0xff] }
  0xfd   : > { %v890_v33 = vmax.f32 %v2896_v28, 0.0  ;;  %v893_v41 = vmax.f32 %v2908_v37, 0.0  ;;  %v1114_v28 = vld [vmem:[#allocation5 + $0xb0] sm:$0x3]  ;;  %v1129_v37 = vld [vmem:[#allocation5 + $0x120] sm:$0xff] }
  0xfe   : > { %1186 = vmatpush.msrb.mxu2 %v1138_v24  ;;  %1164 = vmatpush.msra.mxu1 %v1135_v26  ;;  %v1284_v24 = vld [vmem:[#allocation5 + $0x238] sm:$0x3]  ;;  %v1093_v26 = vld [vmem:[#allocation5 + $0x8] sm:$0xff] }
  0xff   : > { %908 = vrot.lane.b32.xlu1 %v889_v30, %s2526_s20  ;;  %910 = vrot.lane.b32.xlu2 %v890_v33, %s2526_s20 }
 0x100   : > { %v832_v35 = vpop.f32.mrf.mxu0  ;;  %1187 = vmatpush.msrb.mxu2 %v1136_v27  ;;  %v1281_v27 = vld [vmem:[#allocation5 + $0x220] sm:$0xff] }
 0x101   : > { %v870_v38 = vadd.f32 %v832_v35, %v750_v34  ;;  %v1132_v34 = vld [vmem:[#allocation5 + $0x138] sm:$0xff]  ;;  %v1108_v35 = vld [vmem:[#allocation5 + $0x80] sm:$0xff] }
 0x102   : > { %1188 = vmatpush.msrb.mxu2 %v1134_v31  ;;  %v1277_v31 = vld [vmem:[#allocation5 + $0x200] sm:$0xff] }
 0x103   : > { %v2910_v39 = vadd.f32 %v874_v56, %v870_v38  ;;  %v956_v56 = vld [vmem:[%s3247_s3 + $0x88] sm:$0xff]  ;;  %v1130_v38 = vld [vmem:[#allocation5 + $0x128] sm:$0xff] }
 0x104   : > { %1022 = vmatpush.msrb.mxu3 %v956_v56  ;;  %1189 = vmatpush.msrb.mxu2 %v1132_v34  ;;  %v1276_v34 = vld [vmem:[#allocation5 + $0x1f8] sm:$0xff] }
 0x105   : > { %v892_v42 = vmax.f32 %v2910_v39, 0.0 }
 0x106   : > { %1023 = vmatpush.msrb.mxu3 %v955_v58  ;;  %1190 = vmatpush.msrb.mxu2 %v1130_v38  ;;  %v1272_v38 = vld [vmem:[#allocation5 + $0x1d8] sm:$0xff] }
 0x107   : > { %916 = vrot.lane.b32.xlu1 %v893_v41, %s2526_s20  ;;  %912 = vrot.lane.b32.xlu2 %v891_v40, %s2526_s20 }
 0x108   : > { %914 = vrot.lane.b32.xlu0 %v892_v42, %s2526_s20  ;;  %2032 = vmatpush.msk.msra.mxu3 %vm1151_vm6, %v1114_v28  ;;  %v1282_v28 = vld [vmem:[#allocation5 + $0x228] sm:$0xff] }
 0x109   : > { %1191 = vmatpush.msrb.mxu2 %v1128_v44  ;;  %v1266_v44 = vld [vmem:[#allocation5 + $0x1a8] sm:$0xff] }
 0x10a   : > { %1219 = vmatpush.msra.mxu3 %v1112_v29  ;;  %v1279_v29 = vld [vmem:[#allocation5 + $0x210] sm:$0xff] }
 0x10b   : > { %1192 = vmatpush.msrb.mxu2 %v1126_v50 }
 0x10c   : > { %1220 = vmatpush.msra.mxu3 %v1110_v32  ;;  %v1278_v32 = vld [vmem:[#allocation5 + $0x208] sm:$0xff] }
 0x10d   : > { %1193 = vmatpush.msrb.mxu2 %v1124_v57 }
 0x10e   : > { %1221 = vmatpush.msra.mxu3 %v1108_v35  ;;  %v1273_v35 = vld [vmem:[#allocation5 + $0x1e0] sm:$0xff] }
 0x159   : > { %v911_v2 = vpop.permute.xlu2 %910 }
 0x161   : > { %v903_v60 = vpop.permute.xlu0 %902  ;;  %v913_v9 = vpop.permute.xlu2 %912 }
 0x162   : > { %v921_v10 = vsel %vm918_vm4, %v911_v2, %v913_v9  ;;  %v936_v1 = vmax.f32 %v891_v40, %v913_v9  ;;  %v1106_v40 = vld [vmem:[#allocation5 + $0x70] sm:$0xff]  ;;  %v1115_v2 = vld [vmem:[#allocation5 + $0xb8] sm:$0x3]  ;;  %v1105_v9 = vld [vmem:[#allocation5 + $0x68] sm:$0xff] }
 0x163   : > { %1222 = vmatpush.msra.mxu3 %v1106_v40  ;;  %v1270_v40 = vld [vmem:[#allocation5 + $0x1c8] sm:$0xff] }
 0x165   : > { %1223 = vmatpush.msra.mxu3 %v1104_v46  ;;  %v1264_v46 = vld [vmem:[#allocation5 + $0x198] sm:$0xff] }
 0x167   : > { %1224 = vmatpush.msra.mxu3 %v1102_v52 }
 0x169   : > { %v905_v61 = vpop.permute.xlu0 %904  ;;  %v907_v62 = vpop.permute.xlu1 %906 }
 0x16a   : > { %v919_v63 = vsel %vm918_vm4, %v903_v60, %v905_v61  ;;  %v932_v0 = vmax.f32 %v887_v17, %v905_v61 }
 0x16b   : > { %v931_v3 = vmax.f32 %v886_v5, %v919_v63  ;;  %v935_v5 = vmax.f32 %v890_v33, %v921_v10  ;;  %v1131_v33 = vld [vmem:[#allocation5 + $0x130] sm:$0xff]  ;;  %v1103_v10 = vld [vmem:[#allocation5 + $0x58] sm:$0xff] }
 0x16c   : > { %2019 = vmatmul.msk.f32.vlgmr.msrb.gmra.mxu3 %vm962_vm5, %v932_v0  ;;  %v1056_v0 = vld [vmem:[#allocation2] sm:$0xff] }
 0x16d   : > { %995 = vmatmul.f32.vlgmr.msra.gmra.mxu2 %v931_v3  ;;  %v1113_v3 = vld [vmem:[#allocation5 + $0xa8] sm:$0xff] }
 0x171   : > { %v909_v4 = vpop.permute.xlu1 %908 }
 0x172   : > { %v920_v6 = vsel %vm918_vm4, %v907_v62, %v909_v4  ;;  %v934_v7 = vmax.f32 %v889_v30, %v909_v4  ;;  %v1133_v30 = vld [vmem:[#allocation5 + $0x140] sm:$0xff]  ;;  %v1111_v4 = vld [vmem:[#allocation5 + $0x98] sm:$0xff] }
 0x173   : > { %v933_v8 = vmax.f32 %v888_v19, %v920_v6  ;;  %1165 = vmatpush.msra.mxu1 %v1133_v30  ;;  %v1109_v6 = vld [vmem:[#allocation5 + $0x88] sm:$0xff]  ;;  %v1280_v30 = vld [vmem:[#allocation5 + $0x218] sm:$0xff] }
 0x174   : > { %2020 = vmatmul.msk.f32.gmra.mxu3 %vm962_vm5, %v934_v7  ;;  %v1057_v7 = vld [vmem:[#allocation2 + $0x8] sm:$0x7f] }
 0x175   : > { %998 = vmatmul.f32.gmra.mxu2 %v933_v8  ;;  %1166 = vmatpush.msra.mxu1 %v1131_v33  ;;  %v1107_v8 = vld [vmem:[#allocation5 + $0x78] sm:$0xff]  ;;  %v1275_v33 = vld [vmem:[#allocation5 + $0x1f0] sm:$0xff] }
 0x177   : > { %1167 = vmatpush.msra.mxu1 %v1129_v37  ;;  %v1271_v37 = vld [vmem:[#allocation5 + $0x1d0] sm:$0xff] }
 0x179   : > { %v917_v11 = vpop.permute.xlu1 %916  ;;  %1168 = vmatpush.msra.mxu1 %v1127_v43  ;;  %v1265_v43 = vld [vmem:[#allocation5 + $0x1a0] sm:$0xff] }
 0x17a   : > { %v915_v12 = vpop.permute.xlu0 %914  ;;  %v938_v14 = vmax.f32 %v893_v41, %v917_v11 }
 0x17b   : > { %v922_v13 = vsel %vm918_vm4, %v915_v12, %v917_v11  ;;  %1169 = vmatpush.msra.mxu1 %v1125_v49  ;;  %v1098_v11 = vld [vmem:[#allocation5 + $0x30] sm:$0xff]  ;;  %v1099_v12 = vld [vmem:[#allocation5 + $0x38] sm:$0xff] }
 0x17c   : > { %2021 = vmatmul.msk.f32.gmra.mxu3 %vm962_vm5, %v936_v1  ;;  %v937_v15 = vmax.f32 %v892_v42, %v922_v13  ;;  %v1100_v1 = vld [vmem:[#allocation5 + $0x40] sm:$0xff] }
 0x17d   : > { %1001 = vmatmul.f32.gmra.mxu2 %v935_v5  ;;  %1170 = vmatpush.msra.mxu1 %v1123_v54  ;;  %v1101_v5 = vld [vmem:[#allocation5 + $0x48] sm:$0xff]  ;;  %v1096_v13 = vld [vmem:[#allocation5 + $0x20] sm:$0xff] }
 0x17e   : > { %1225 = vmatpush.msra.mxu3 %v1100_v1 }
 0x180   : > { %1226 = vmatpush.msra.mxu3 %v1098_v11 }
 0x182   : > { %1227 = vmatpush.msra.mxu3 %v1096_v13 }
 0x184   : > { %2022 = vmatmul.msk.f32.gmra.mxu3 %vm962_vm5, %v938_v14  ;;  %v1097_v14 = vld [vmem:[#allocation5 + $0x28] sm:$0xff] }
 0x185   : > { %1004 = vmatmul.f32.gmra.mxu2 %v937_v15  ;;  %v1094_v15 = vld [vmem:[#allocation5 + $0x10] sm:$0xff] }
 0x186   : > { %1228 = vmatpush.msra.mxu3 %v1094_v15 }
 0x1ef   : > { %v1025_v16 = vpop.f32.mrf.mxu3 }
 0x1f0   : > { %v996_v17 = vpop.f32.mrf.mxu2 }
 0x1f1   : > { %v1026_v47 = vadd.f32 %v1025_v16, %v996_v17  ;;  %v1095_v16 = vld [vmem:[#allocation5 + $0x18] sm:$0xff]  ;;  %v1121_v17 = vld [vmem:[#allocation5 + $0xe0] sm:$0xff] }
 0x1f2   : > { %1171 = vmatpush.msra.mxu1 %v1121_v17 }
 0x1f3   : > { %v1041_v58 = vrot.slane %v1026_v47, 1 }
 0x1f7   : > { %v1028_v18 = vpop.f32.mrf.mxu3 }
 0x1f8   : > { %v999_v19 = vpop.f32.mrf.mxu2 }
 0x1f9   : > { %v1029_v41 = vadd.f32 %v1028_v18, %v999_v19  ;;  %v1122_v18 = vld [vmem:[#allocation5 + $0xe8] sm:$0xff]  ;;  %v1119_v19 = vld [vmem:[#allocation5 + $0xd0] sm:$0xff] }
 0x1fa   : > { %1194 = vmatpush.msrb.mxu2 %v1122_v18  ;;  %1172 = vmatpush.msra.mxu1 %v1119_v19 }
 0x1fb   : > { %v1042_v53 = vrot.slane %v1029_v41, 1 }
 0x1fc   : > { %1195 = vmatpush.msrb.mxu2 %v1120_v20  ;;  %1173 = vmatpush.msra.mxu1 %v1117_v21 }
 0x1fd   : > { %v1043_v61 = vsel %vm640_vm0, %v1041_v58, %v1042_v53 }
 0x1fe   : > { %v1052_v63 = vmax.f32 %v1026_v47, %v1043_v61  ;;  %1196 = vmatpush.msrb.mxu2 %v1118_v22  ;;  %v1261_v47 = vld [vmem:[#allocation5 + $0x180] sm:$0xff] }
 0x1ff   : > { %v1031_v23 = vpop.f32.mrf.mxu3  ;;  %v1348_v61 = vld [vmem:[#allocation7] sm:$0x3] }
 0x200   : > { %v1002_v25 = vpop.f32.mrf.mxu2  ;;  %2041 = vmatpush.msk.msra.mxu2 %vm1151_vm6, %v1284_v24  ;;  %v1399_v24 = vld [vmem:[%s3251_s7 + $0x78] sm:$0xff] }
 0x201   : > { %v1032_v36 = vadd.f32 %v1031_v23, %v1002_v25  ;;  %v1283_v23 = vld [vmem:[#allocation5 + $0x230] sm:$0x3]  ;;  %v1092_v25 = vld [vmem:[#allocation5] sm:$0xff] }
 0x202   : > { %1229 = vmatpush.msra.mxu3 %v1092_v25  ;;  %2038 = vmatpush.msk.msrb.mxu1 %vm1151_vm6, %v1283_v23  ;;  %v1398_v25 = vld [vmem:[%s3251_s7 + $0x70] sm:$0xff] }
 0x203   : > { %v1044_v48 = vrot.slane %v1032_v36, 1  ;;  %1326 = vmatpush.msra.mxu2 %v1282_v28  ;;  %v1396_v28 = vld [vmem:[%s3251_s7 + $0x60] sm:$0xff] }
 0x204   : > { %1303 = vmatpush.msrb.mxu1 %v1281_v27  ;;  %1420 = vmatpush.msrb.mxu3 %v1399_v24  ;;  %v1409_v27 = vld [vmem:[%s3251_s7 + $0xc8] sm:$0x7f]  ;;  %v1517_v24 = vld [vmem:[#allocation10 + $0x60] sm:$0xff] }
 0x205   : > { %v1045_v60 = vsel %vm640_vm0, %v1042_v53, %v1044_v48  ;;  %1327 = vmatpush.msra.mxu2 %v1280_v30  ;;  %v1394_v30 = vld [vmem:[%s3251_s7 + $0x50] sm:$0xff] }
 0x206   : > { %v1053_v62 = vmax.f32 %v1029_v41, %v1045_v60  ;;  %1304 = vmatpush.msrb.mxu1 %v1279_v29  ;;  %v1267_v41 = vld [vmem:[#allocation5 + $0x1b0] sm:$0xff]  ;;  %1421 = vmatpush.msrb.mxu3 %v1398_v25  ;;  %v1395_v29 = vld [vmem:[%s3251_s7 + $0x58] sm:$0xff] }
 0x207   : > { %v1034_v39 = vpop.f32.mrf.mxu3  ;;  %1328 = vmatpush.msra.mxu2 %v1278_v32  ;;  %v1408_v32 = vld [vmem:[%s3251_s7 + $0xc0] sm:$0xff] }
 0x208   : > { %v1005_v42 = vpop.f32.mrf.mxu2  ;;  %1305 = vmatpush.msrb.mxu1 %v1277_v31  ;;  %v1393_v31 = vld [vmem:[%s3251_s7 + $0x48] sm:$0xff]  ;;  %v1504_v25 = vld [vmem:[#allocation10] sm:$0xff] }
 0x209   : > { %v1035_v45 = vadd.f32 %v1034_v39, %v1005_v42  ;;  %1329 = vmatpush.msra.mxu2 %v1276_v34  ;;  %v1269_v39 = vld [vmem:[#allocation5 + $0x1c0] sm:$0xff]  ;;  %v1268_v42 = vld [vmem:[#allocation5 + $0x1b8] sm:$0xff]  ;;  %v1407_v34 = vld [vmem:[%s3251_s7 + $0xb8] sm:$0xff] }
 0x20a   : > { %1306 = vmatpush.msrb.mxu1 %v1275_v33  ;;  %v1392_v33 = vld [vmem:[%s3251_s7 + $0x40] sm:$0xff] }
 0x20b   : > { %v1046_v51 = vrot.slane %v1035_v45, 1 }
 0x20c   : > { %1307 = vmatpush.msrb.mxu1 %v1273_v35  ;;  %v1391_v35 = vld [vmem:[%s3251_s7 + $0x38] sm:$0xff] }
 0x20d   : > { %v1055_v55 = vmax.f32 %v1035_v45, %v1046_v51  ;;  %v1047_v56 = vsel %vm640_vm0, %v1044_v48, %v1046_v51  ;;  %v1263_v45 = vld [vmem:[#allocation5 + $0x190] sm:$0xff]  ;;  %v1262_v48 = vld [vmem:[#allocation5 + $0x188] sm:$0xff] }
 0x20e   : > { %v1054_v59 = vmax.f32 %v1032_v36, %v1047_v56  ;;  %v1274_v36 = vld [vmem:[#allocation5 + $0x1e8] sm:$0xff]  ;;  %1308 = vmatpush.msrb.mxu1 %v1271_v37  ;;  %v1390_v37 = vld [vmem:[%s3251_s7 + $0x30] sm:$0xff] }
 0x20f   : > { %2023 = vmatpush.msk.msra.mxu0 %vm1065_vm7, %v1055_v55  ;;  %1330 = vmatpush.msra.mxu2 %v1274_v36  ;;  %v1406_v36 = vld [vmem:[%s3251_s7 + $0xb0] sm:$0xff] }
 0x210   : > { %1309 = vmatpush.msrb.mxu1 %v1269_v39  ;;  %v1389_v39 = vld [vmem:[%s3251_s7 + $0x28] sm:$0xff] }
 0x211   : > { %1082 = vmatpush.msra.mxu0 %v1054_v59  ;;  %1331 = vmatpush.msra.mxu2 %v1272_v38  ;;  %v1405_v38 = vld [vmem:[%s3251_s7 + $0xa8] sm:$0xff] }
 0x212   : > { %1310 = vmatpush.msrb.mxu1 %v1267_v41  ;;  %v1388_v41 = vld [vmem:[%s3251_s7 + $0x20] sm:$0xff] }
 0x213   : > { %1083 = vmatpush.msra.mxu0 %v1053_v62  ;;  %1332 = vmatpush.msra.mxu2 %v1270_v40  ;;  %v1404_v40 = vld [vmem:[%s3251_s7 + $0xa0] sm:$0xff] }
 0x214   : > { %1311 = vmatpush.msrb.mxu1 %v1265_v43  ;;  %v1387_v43 = vld [vmem:[%s3251_s7 + $0x18] sm:$0xff] }
 0x215   : > { %1084 = vmatpush.msra.mxu0 %v1052_v63  ;;  %1333 = vmatpush.msra.mxu2 %v1268_v42  ;;  %v1403_v42 = vld [vmem:[%s3251_s7 + $0x98] sm:$0xff] }
 0x216   : > { %2024 = vmatmul.msk.f32.vlgmr.msra.gmra.mxu0 %vm1058_vm8, %v1056_v0  ;;  %1312 = vmatpush.msrb.mxu1 %v1263_v45  ;;  %v1350_v0 = vperm.slane %v1348_v61, 0  ;;  %v1386_v45 = vld [vmem:[%s3251_s7 + $0x10] sm:$0xff] }
 0x217   : > { %2035 = vmatpush.msk.msrb.mxu0 %vm1151_vm6, %v1115_v2  ;;  %1334 = vmatpush.msra.mxu2 %v1266_v44  ;;  %v1402_v44 = vld [vmem:[%s3251_s7 + $0x90] sm:$0xff] }
 0x218   : > { %1313 = vmatpush.msrb.mxu1 %v1261_v47  ;;  %v1385_v47 = vld [vmem:[%s3251_s7 + $0x8] sm:$0xff] }
 0x219   : > { %1242 = vmatpush.msrb.mxu0 %v1113_v3  ;;  %1335 = vmatpush.msra.mxu2 %v1264_v46  ;;  %v1401_v46 = vld [vmem:[%s3251_s7 + $0x88] sm:$0xff] }
 0x21b   : > { %1243 = vmatpush.msrb.mxu0 %v1111_v4  ;;  %1336 = vmatpush.msra.mxu2 %v1262_v48  ;;  %v1400_v48 = vld [vmem:[%s3251_s7 + $0x80] sm:$0xff] }
 0x21d   : > { %1244 = vmatpush.msrb.mxu0 %v1109_v6 }
 0x21e   : > { %2025 = vmatmul.msk.f32.gmra.mxu0 %vm1058_vm8, %v1057_v7 }
 0x21f   : > { %1245 = vmatpush.msrb.mxu0 %v1107_v8 }
 0x221   : > { %1246 = vmatpush.msrb.mxu0 %v1105_v9  ;;  %v1351_v9 = vperm.slane %v1348_v61, 1  ;;  %v1527_v61 = vld [vmem:[#allocation10 + $0xb0] sm:$0xff] }
 0x223   : > { %1247 = vmatpush.msrb.mxu0 %v1103_v10 }
 0x225   : > { %1248 = vmatpush.msrb.mxu0 %v1101_v5 }
 0x227   : > { %1249 = vmatpush.msrb.mxu0 %v1099_v12 }
 0x229   : > { %1250 = vmatpush.msrb.mxu0 %v1097_v14 }
 0x22b   : > { %1251 = vmatpush.msrb.mxu0 %v1095_v16 }
 0x22d   : > { %1252 = vmatpush.msrb.mxu0 %v1093_v26  ;;  %v1397_v26 = vld [vmem:[%s3251_s7 + $0x68] sm:$0xff] }
 0x22e   : > { %1422 = vmatpush.msrb.mxu3 %v1397_v26 }
 0x22f   : > { %2044 = vmatpush.msk.msra.mxu0 %vm640_vm0, %v1409_v27  ;;  %v1662_v27 = vld [vmem:[#allocation10 + $0x1d8] sm:$0xff] }
 0x230   : > { %1423 = vmatpush.msrb.mxu3 %v1396_v28  ;;  %v1699_v28 = vld [vmem:[#allocation10 + $0x238] sm:$0xff] }
 0x231   : > { %1450 = vmatpush.msra.mxu0 %v1408_v32  ;;  %v1661_v32 = vld [vmem:[#allocation10 + $0x1d0] sm:$0xff] }
 0x232   : > { %1424 = vmatpush.msrb.mxu3 %v1395_v29 }
 0x233   : > { %1451 = vmatpush.msra.mxu0 %v1407_v34 }
 0x234   : > { %1425 = vmatpush.msrb.mxu3 %v1394_v30 }
 0x235   : > { %1452 = vmatpush.msra.mxu0 %v1406_v36  ;;  %v1660_v36 = vld [vmem:[#allocation10 + $0x1c8] sm:$0xff] }
 0x236   : > { %1426 = vmatpush.msrb.mxu3 %v1393_v31 }
 0x237   : > { %1453 = vmatpush.msra.mxu0 %v1405_v38 }
 0x238   : > { %1427 = vmatpush.msrb.mxu3 %v1392_v33  ;;  %v1698_v33 = vld [vmem:[#allocation10 + $0x230] sm:$0xff] }
 0x239   : > { %1454 = vmatpush.msra.mxu0 %v1404_v40  ;;  %v1659_v40 = vld [vmem:[#allocation10 + $0x1c0] sm:$0xff] }
 0x23a   : > { %1428 = vmatpush.msrb.mxu3 %v1391_v35 }
 0x23b   : > { %1455 = vmatpush.msra.mxu0 %v1403_v42 }
 0x23c   : > { %1429 = vmatpush.msrb.mxu3 %v1390_v37  ;;  %v1697_v37 = vld [vmem:[#allocation10 + $0x228] sm:$0xff] }
 0x23d   : > { %1456 = vmatpush.msra.mxu0 %v1402_v44  ;;  %v1658_v44 = vld [vmem:[#allocation10 + $0x1b8] sm:$0xff] }
 0x23e   : > { %1430 = vmatpush.msrb.mxu3 %v1389_v39 }
 0x23f   : > { %1457 = vmatpush.msra.mxu0 %v1401_v46  ;;  %v1695_v46 = vld [vmem:[#allocation10 + $0x218] sm:$0xff] }
 0x240   : > { %1431 = vmatpush.msrb.mxu3 %v1388_v41  ;;  %v1696_v41 = vld [vmem:[#allocation10 + $0x220] sm:$0xff] }
 0x241   : > { %1458 = vmatpush.msra.mxu0 %v1400_v48  ;;  %v1587_v48 = vld [vmem:[#allocation10 + $0x110] sm:$0xff] }
 0x242   : > { %1432 = vmatpush.msrb.mxu3 %v1387_v43  ;;  %v1475_v43 = vld [vmem:[#allocation8] sm:$0x3f] }
 0x244   : > { %1433 = vmatpush.msrb.mxu3 %v1386_v45  ;;  %v1588_v45 = vld [vmem:[#allocation10 + $0x118] sm:$0xff] }
 0x246   : > { %1434 = vmatpush.msrb.mxu3 %v1385_v47  ;;  %v1657_v47 = vld [vmem:[#allocation10 + $0x1b0] sm:$0xff] }
 0x293   : > { %v1086_v49 = vpop.f32.mrf.mxu0 }
 0x294   : > { %2033 = vmatmul.msk.f32.vlgmr.msra.gmra.mxu3 %vm1146_vm9, %v1086_v49  ;;  %2036 = vmatmul.msk.f32.vlgmr.msrb.gmra.mxu0 %vm1146_vm9, %v1086_v49  ;;  %v1143_v51 = vrot.slane %v1086_v49, 1  ;;  %v1285_v55 = vrot.slane %v1086_v49, 2  ;;  %v1384_v49 = vld [vmem:[%s3251_s7] sm:$0xff] }
 0x295   : > { %1435 = vmatpush.msrb.mxu3 %v1384_v49  ;;  %v1586_v49 = vld [vmem:[#allocation10 + $0x108] sm:$0xff] }
 0x29b   : > { %v1089_v50 = vpop.f32.mrf.mxu0 }
 0x29c   : > { %v1144_v52 = vrot.slane %v1089_v50, 1  ;;  %2034 = vmatmul.msk.f32.gmra.mxu3 %vm1146_vm9, %v1089_v50  ;;  %2037 = vmatmul.msk.f32.gmra.mxu0 %vm1146_vm9, %v1089_v50  ;;  %v1286_v54 = vrot.slane %v1089_v50, 2 }
 0x29e   : > { %v1145_v53 = vsel %vm640_vm0, %v1143_v51, %v1144_v52  ;;  %v1287_v56 = vsel %vm790_vm2, %v1285_v55, %v1286_v54 }
 0x29f   : > { %2027 = vmatmul.msk.f32.vlgmr.msra.gmra.mxu1 %vm1146_vm9, %v1145_v53  ;;  %2030 = vmatmul.msk.f32.vlgmr.msrb.gmra.mxu2 %vm1146_vm9, %v1145_v53 }
 0x2a7   : > { %2028 = vmatmul.msk.f32.gmra.mxu1 %vm1146_vm9, %v1144_v52  ;;  %2031 = vmatmul.msk.f32.gmra.mxu2 %vm1146_vm9, %v1144_v52 }
 0x2af   : > { %2039 = vmatmul.msk.f32.vlgmr.msrb.gmra.mxu1 %vm1146_vm9, %v1287_v56  ;;  %2042 = vmatmul.msk.f32.vlgmr.msra.gmra.mxu2 %vm1146_vm9, %v1287_v56 }
 0x2b7   : > { %2040 = vmatmul.msk.f32.gmra.mxu1 %vm1146_vm9, %v1286_v54  ;;  %2043 = vmatmul.msk.f32.gmra.mxu2 %vm1146_vm9, %v1286_v54 }
 0x311   : > { %v1254_v4 = vpop.f32.mrf.mxu0 }
 0x317   : > { %v1231_v60 = vpop.f32.mrf.mxu3 }
 0x319   : > { %v1257_v17 = vpop.f32.mrf.mxu0 }
 0x31c   : > { %v1175_v57 = vpop.f32.mrf.mxu1 }
 0x31d   : > { %v1232_v63 = vadd.f32 %v1231_v60, %v1175_v57  ;;  %v1528_v60 = vld [vmem:[#allocation10 + $0xb8] sm:$0xff] }
 0x31e   : > { %1538 = vmatpush.msrb.mxu2 %v1528_v60  ;;  %v1580_v60 = vld [vmem:[#allocation10 + $0xd8] sm:$0xff] }
 0x31f   : > { %v1234_v10 = vpop.f32.mrf.mxu3 }
 0x320   : > { %1539 = vmatpush.msrb.mxu2 %v1527_v61  ;;  %v1617_v61 = vld [vmem:[#allocation10 + $0x138] sm:$0xff] }
 0x322   : > { %v1198_v58 = vpop.f32.mrf.mxu2 }
 0x323   : > { %v1255_v7 = vadd.f32 %v1254_v4, %v1198_v58  ;;  %v1512_v4 = vld [vmem:[#allocation10 + $0x40] sm:$0xff] }
 0x324   : > { %v1178_v59 = vpop.f32.mrf.mxu1 }
 0x325   : > { %v1235_v5 = vadd.f32 %v1234_v10, %v1178_v59  ;;  %v1625_v10 = vld [vmem:[#allocation10 + $0x178] sm:$0xff] }
 0x326   : > { %1633 = vmatpush.msrb.mxu0 %v1625_v10  ;;  %v1653_v10 = vld [vmem:[#allocation10 + $0x190] sm:$0xff] }
 0x32a   : > { %v1201_v62 = vpop.f32.mrf.mxu2 }
 0x32b   : > { %v1258_v18 = vadd.f32 %v1257_v17, %v1201_v62  ;;  %v1515_v62 = vld [vmem:[#allocation10 + $0x58] sm:$0xff] }
 0x32c   : > { %v1315_v2 = vpop.f32.mrf.mxu1  ;;  %1560 = vmatpush.msra.mxu3 %v1515_v62  ;;  %v1693_v62 = vld [vmem:[#allocation10 + $0x208] sm:$0xff] }
 0x32d   : > { %v1344_v3 = vadd.f32 %v1315_v2, %v1232_v63  ;;  %v1514_v63 = vld [vmem:[#allocation10 + $0x50] sm:$0xff]  ;;  %v1513_v2 = vld [vmem:[#allocation10 + $0x48] sm:$0xff] }
 0x32e   : > { %1561 = vmatpush.msra.mxu3 %v1514_v63  ;;  %v1579_v63 = vld [vmem:[#allocation10 + $0xd0] sm:$0xff] }
 0x32f   : > { %v3018_v6 = vadd.f32 %v1350_v0, %v1344_v3  ;;  %v1525_v3 = vld [vmem:[#allocation10 + $0xa0] sm:$0xff] }
 0x330   : > { %1562 = vmatpush.msra.mxu3 %v1513_v2  ;;  %v1656_v2 = vld [vmem:[#allocation10 + $0x1a8] sm:$0xff] }
 0x331   : > { %v1358_v8 = vmax.f32 %v3018_v6, 0.0  ;;  %v1524_v6 = vld [vmem:[#allocation10 + $0x98] sm:$0xff] }
 0x332   : > { %v1338_v1 = vpop.f32.mrf.mxu2  ;;  %1563 = vmatpush.msra.mxu3 %v1512_v4  ;;  %v1578_v4 = vld [vmem:[#allocation10 + $0xc8] sm:$0xff] }
 0x333   : > { %v1345_v11 = vadd.f32 %v1338_v1, %v1255_v7  ;;  %1366 = vrot.lane.b32.xlu2 %v1358_v8, %s2526_s20  ;;  %v1511_v7 = vld [vmem:[#allocation10 + $0x38] sm:$0xff]  ;;  %v1522_v1 = vld [vmem:[#allocation10 + $0x88] sm:$0xff] }
 0x334   : > { %v1318_v12 = vpop.f32.mrf.mxu1  ;;  %1564 = vmatpush.msra.mxu3 %v1511_v7  ;;  %v1615_v7 = vld [vmem:[#allocation10 + $0x128] sm:$0xff] }
 0x335   : > { %v3024_v13 = vadd.f32 %v1351_v9, %v1345_v11  ;;  %v1346_v14 = vadd.f32 %v1318_v12, %v1235_v5  ;;  %v1509_v5 = vld [vmem:[#allocation10 + $0x28] sm:$0xff]  ;;  %v1624_v11 = vld [vmem:[#allocation10 + $0x170] sm:$0xff] }
 0x336   : > { %1634 = vmatpush.msrb.mxu0 %v1624_v11  ;;  %v1577_v11 = vld [vmem:[#allocation10 + $0xc0] sm:$0xff] }
 0x337   : > { %v1359_v15 = vmax.f32 %v3024_v13, 0.0  ;;  %v3027_v16 = vadd.f32 %v1350_v0, %v1346_v14  ;;  %v1526_v0 = vld [vmem:[#allocation10 + $0xa8] sm:$0xff]  ;;  %v1521_v13 = vld [vmem:[#allocation10 + $0x80] sm:$0xff] }
 0x338   : > { %1540 = vmatpush.msrb.mxu2 %v1526_v0  ;;  %v1508_v14 = vld [vmem:[#allocation10 + $0x20] sm:$0xff]  ;;  %v1616_v0 = vld [vmem:[#allocation10 + $0x130] sm:$0xff] }
 0x339   : > { %v1360_v19 = vmax.f32 %v3027_v16, 0.0  ;;  %1368 = vrot.lane.b32.xlu0 %v1359_v15, %s2526_s20  ;;  %v1622_v16 = vld [vmem:[#allocation10 + $0x160] sm:$0xff] }
 0x33a   : > { %v1341_v20 = vpop.f32.mrf.mxu2  ;;  %1541 = vmatpush.msrb.mxu2 %v1525_v3  ;;  %v1692_v3 = vld [vmem:[#allocation10 + $0x200] sm:$0xff] }
 0x33b   : > { %v1347_v21 = vadd.f32 %v1341_v20, %v1258_v18  ;;  %1370 = vrot.lane.b32.xlu1 %v1360_v19, %s2526_s20  ;;  %v1520_v18 = vld [vmem:[#allocation10 + $0x78] sm:$0xff]  ;;  %v1519_v20 = vld [vmem:[#allocation10 + $0x70] sm:$0xff] }
 0x33c   : > { %1542 = vmatpush.msrb.mxu2 %v1524_v6  ;;  %v1655_v6 = vld [vmem:[#allocation10 + $0x1a0] sm:$0xff] }
 0x33d   : > { %v3036_v22 = vadd.f32 %v1351_v9, %v1347_v21  ;;  %v1510_v9 = vld [vmem:[#allocation10 + $0x30] sm:$0xff] }
 0x33e   : > { %1565 = vmatpush.msra.mxu3 %v1510_v9  ;;  %v1506_v21 = vld [vmem:[#allocation10 + $0x10] sm:$0xff]  ;;  %v1691_v9 = vld [vmem:[#allocation10 + $0x1f8] sm:$0xff] }
 0x33f   : > { %v1361_v23 = vmax.f32 %v3036_v22, 0.0  ;;  %v1518_v22 = vld [vmem:[#allocation10 + $0x68] sm:$0xff] }
 0x340   : > { %1566 = vmatpush.msra.mxu3 %v1509_v5  ;;  %v1689_v5 = vld [vmem:[#allocation10 + $0x1e8] sm:$0xff] }
 0x341   : > { %1372 = vrot.lane.b32.xlu2 %v1361_v23, %s2526_s20 }
 0x342   : > { %1567 = vmatpush.msra.mxu3 %v1508_v14  ;;  %v1651_v14 = vld [vmem:[#allocation10 + $0x180] sm:$0xff] }
 0x38d   : > { %v1367_v50 = vpop.permute.xlu2 %1366 }
 0x39b   : > { %v1373_v56 = vpop.permute.xlu2 %1372 }
 0x39c   : > { %v1383_v58 = vmax.f32 %v1361_v23, %v1373_v56  ;;  %v1505_v23 = vld [vmem:[#allocation10 + $0x8] sm:$0xff] }
 0x3ab   : > { %v1369_v51 = vpop.permute.xlu0 %1368 }
 0x3ac   : > { %v1374_v52 = vsel %vm918_vm4, %v1367_v50, %v1369_v51  ;;  %v1381_v53 = vmax.f32 %v1359_v15, %v1369_v51  ;;  %v1623_v15 = vld [vmem:[#allocation10 + $0x168] sm:$0xff]  ;;  %v1585_v50 = vld [vmem:[#allocation10 + $0x100] sm:$0xff]  ;;  %v1584_v51 = vld [vmem:[#allocation10 + $0xf8] sm:$0xff] }
 0x3ad   : > { %v1380_v54 = vmax.f32 %v1358_v8, %v1374_v52  ;;  %v1371_v55 = vpop.permute.xlu1 %1370  ;;  %v1523_v8 = vld [vmem:[#allocation10 + $0x90] sm:$0xff]  ;;  %1635 = vmatpush.msrb.mxu0 %v1623_v15  ;;  %v1621_v52 = vld [vmem:[#allocation10 + $0x158] sm:$0xff]  ;;  %v1688_v15 = vld [vmem:[#allocation10 + $0x1e0] sm:$0xff] }
 0x3ae   : > { %2045 = vmatmul.msk.f32.vlgmr.msra.gmra.mxu0 %vm1410_vm10, %v1381_v53  ;;  %v1375_v57 = vsel %vm918_vm4, %v1371_v55, %v1373_v56  ;;  %1543 = vmatpush.msrb.mxu2 %v1523_v8  ;;  %v1583_v53 = vld [vmem:[#allocation10 + $0xf0] sm:$0xff]  ;;  %v1582_v55 = vld [vmem:[#allocation10 + $0xe8] sm:$0xff]  ;;  %v1654_v8 = vld [vmem:[#allocation10 + $0x198] sm:$0xff] }
 0x3af   : > { %1436 = vmatmul.f32.vlgmr.msrb.gmra.mxu3 %v1380_v54  ;;  %v1382_v59 = vmax.f32 %v1360_v19, %v1375_v57  ;;  %v1507_v19 = vld [vmem:[#allocation10 + $0x18] sm:$0xff]  ;;  %1636 = vmatpush.msrb.mxu0 %v1622_v16  ;;  %v1620_v54 = vld [vmem:[#allocation10 + $0x150] sm:$0xff]  ;;  %v1619_v56 = vld [vmem:[#allocation10 + $0x148] sm:$0xff] }
 0x3b0   : > { %1544 = vmatpush.msrb.mxu2 %v1522_v1  ;;  %1568 = vmatpush.msra.mxu3 %v1507_v19  ;;  %v1581_v57 = vld [vmem:[#allocation10 + $0xe0] sm:$0xff]  ;;  %v1690_v1 = vld [vmem:[#allocation10 + $0x1f0] sm:$0xff] }
 0x3b1   : > { %1637 = vmatpush.msrb.mxu0 %v1621_v52  ;;  %v1741_v16 = vld [vmem:[%s3255_s11 + $0x70] sm:$0xff]  ;;  %v1738_v19 = vld [vmem:[%s3255_s11 + $0x58] sm:$0xff] }
 0x3b2   : > { %1545 = vmatpush.msrb.mxu2 %v1521_v13  ;;  %1569 = vmatpush.msra.mxu3 %v1506_v21  ;;  %v1652_v13 = vld [vmem:[#allocation10 + $0x188] sm:$0xff] }
 0x3b3   : > { %1638 = vmatpush.msrb.mxu0 %v1620_v54  ;;  %v1736_v21 = vld [vmem:[%s3255_s11 + $0x48] sm:$0xff] }
 0x3b4   : > { %1546 = vmatpush.msrb.mxu2 %v1520_v18  ;;  %1570 = vmatpush.msra.mxu3 %v1505_v23  ;;  %v1739_v18 = vld [vmem:[%s3255_s11 + $0x60] sm:$0xff] }
 0x3b5   : > { %1639 = vmatpush.msrb.mxu0 %v1619_v56 }
 0x3b6   : > { %2046 = vmatmul.msk.f32.gmra.mxu0 %vm1410_vm10, %v1383_v58  ;;  %1547 = vmatpush.msrb.mxu2 %v1519_v20  ;;  %v1618_v58 = vld [vmem:[#allocation10 + $0x140] sm:$0xff]  ;;  %v1737_v20 = vld [vmem:[%s3255_s11 + $0x50] sm:$0xff] }
 0x3b7   : > { %1439 = vmatmul.f32.gmra.mxu3 %v1382_v59  ;;  %1640 = vmatpush.msrb.mxu0 %v1618_v58  ;;  %v1694_v59 = vld [vmem:[#allocation10 + $0x210] sm:$0xff] }
 0x3b8   : > { %1548 = vmatpush.msrb.mxu2 %v1518_v22  ;;  %1571 = vmatpush.msra.mxu3 %v1504_v25 }
 0x3b9   : > { %1641 = vmatpush.msrb.mxu0 %v1617_v61  ;;  %v1768_v61 = vld [vmem:[%s3257_s13] sm:$0xff] }
 0x3ba   : > { %1549 = vmatpush.msrb.mxu2 %v1517_v24  ;;  %1707 = vmatpush.msrb.mxu3 %v1699_v28  ;;  %v1735_v28 = vld [vmem:[%s3255_s11 + $0x40] sm:$0xff] }
 0x3bb   : > { %1642 = vmatpush.msrb.mxu0 %v1616_v0 }
 0x3bc   : > { %1670 = vmatpush.msra.mxu2 %v1662_v27  ;;  %1708 = vmatpush.msrb.mxu3 %v1698_v33  ;;  %v1730_v33 = vld [vmem:[%s3255_s11 + $0x18] sm:$0xff] }
 0x3bd   : > { %1643 = vmatpush.msrb.mxu0 %v1615_v7 }
 0x3be   : > { %1671 = vmatpush.msra.mxu2 %v1661_v32  ;;  %1709 = vmatpush.msrb.mxu3 %v1697_v37  ;;  %v1731_v32 = vld [vmem:[%s3255_s11 + $0x20] sm:$0xff]  ;;  %v1778_v37 = vld [vmem:[%s3257_s13 + $0x50] sm:$0xf] }
 0x3c0   : > { %1672 = vmatpush.msra.mxu2 %v1660_v36  ;;  %1710 = vmatpush.msrb.mxu3 %v1696_v41  ;;  %v1727_v36 = vld [vmem:[%s3255_s11] sm:$0xff]  ;;  %v1774_v41 = vld [vmem:[%s3257_s13 + $0x30] sm:$0xff] }
 0x3c2   : > { %1673 = vmatpush.msra.mxu2 %v1659_v40  ;;  %1711 = vmatpush.msrb.mxu3 %v1695_v46  ;;  %v1775_v40 = vld [vmem:[%s3257_s13 + $0x38] sm:$0xff] }
 0x3c4   : > { %1674 = vmatpush.msra.mxu2 %v1658_v44  ;;  %1712 = vmatpush.msrb.mxu3 %v1694_v59  ;;  %v1771_v44 = vld [vmem:[%s3257_s13 + $0x18] sm:$0xff]  ;;  %v1770_v59 = vld [vmem:[%s3257_s13 + $0x10] sm:$0xff] }
 0x3c6   : > { %1675 = vmatpush.msra.mxu2 %v1657_v47  ;;  %1713 = vmatpush.msrb.mxu3 %v1693_v62  ;;  %v1742_v62 = vld [vmem:[#allocation13] sm:$0x1] }
 0x3c8   : > { %1676 = vmatpush.msra.mxu2 %v1656_v2  ;;  %1714 = vmatpush.msrb.mxu3 %v1692_v3  ;;  %v1779_v3 = vld [vmem:[#allocation14] sm:$0x1] }
 0x3ca   : > { %1677 = vmatpush.msra.mxu2 %v1655_v6  ;;  %1715 = vmatpush.msrb.mxu3 %v1691_v9 }
 0x3cc   : > { %1678 = vmatpush.msra.mxu2 %v1654_v8  ;;  %1716 = vmatpush.msrb.mxu3 %v1690_v1 }
 0x3ce   : > { %1679 = vmatpush.msra.mxu2 %v1653_v10  ;;  %1717 = vmatpush.msrb.mxu3 %v1689_v5 }
 0x3d0   : > { %1680 = vmatpush.msra.mxu2 %v1652_v13  ;;  %1718 = vmatpush.msrb.mxu3 %v1688_v15 }
 0x3d2   : > { %1681 = vmatpush.msra.mxu2 %v1651_v14 }
 0x42b   : > { %v1460_v12 = vpop.f32.mrf.mxu0 }
 0x432   : > { %v1437_v17 = vpop.f32.mrf.mxu3 }
 0x433   : > { %v1461_v26 = vadd.f32 %v1460_v12, %v1437_v17  ;;  %v1463_v29 = vpop.f32.mrf.mxu0  ;;  %v1614_v12 = vld [vmem:[#allocation10 + $0x120] sm:$0xff]  ;;  %v1740_v17 = vld [vmem:[%s3255_s11 + $0x68] sm:$0xff] }
 0x434   : > { %1644 = vmatpush.msrb.mxu0 %v1614_v12 }
 0x435   : > { %v1468_v34 = vrot.slane %v1461_v26, 1 }
 0x436   : > { %2056 = vmatpush.msk.msra.mxu0 %vm1480_vm11, %v1778_v37 }
 0x43a   : > { %v1440_v30 = vpop.f32.mrf.mxu3 }
 0x43b   : > { %v1464_v31 = vadd.f32 %v1463_v29, %v1440_v30  ;;  %v1734_v29 = vld [vmem:[%s3255_s11 + $0x38] sm:$0xff]  ;;  %v1733_v30 = vld [vmem:[%s3255_s11 + $0x30] sm:$0xff] }
 0x43d   : > { %v1469_v35 = vrot.slane %v1464_v31, 1 }
 0x43f   : > { %v1474_v38 = vmax.f32 %v1464_v31, %v1469_v35  ;;  %v1470_v39 = vsel %vm640_vm0, %v1468_v34, %v1469_v35  ;;  %v1732_v31 = vld [vmem:[%s3255_s11 + $0x28] sm:$0xff]  ;;  %v1729_v34 = vld [vmem:[%s3255_s11 + $0x10] sm:$0xff]  ;;  %vm1807_vm0 = vcmask 73728  }
 0x440   : > { %v1473_v42 = vmax.f32 %v1461_v26, %v1470_v39  ;;  %v1728_v35 = vld [vmem:[%s3255_s11 + $0x8] sm:$0xff]  ;;  %v1776_v39 = vld [vmem:[%s3257_s13 + $0x40] sm:$0xff] }
 0x441   : > { %2047 = vmatpush.msk.msra.mxu1 %vm1480_vm11, %v1474_v38  ;;  %v1777_v38 = vld [vmem:[%s3257_s13 + $0x48] sm:$0xff] }
 0x442   : > { %1793 = vmatpush.msra.mxu0 %v1777_v38 }
 0x443   : > { %1499 = vmatpush.msra.mxu1 %v1473_v42  ;;  %v1773_v42 = vld [vmem:[%s3257_s13 + $0x28] sm:$0xff] }
 0x444   : > { %2048 = vmatmul.msk.f32.vlgmr.msra.gmra.mxu1 %vm1476_vm12, %v1475_v43  ;;  %1794 = vmatpush.msra.mxu0 %v1776_v39  ;;  %v1772_v43 = vld [vmem:[%s3257_s13 + $0x20] sm:$0xff] }
 0x445   : > { %1596 = vmatpush.msrb.mxu1 %v1588_v45 }
 0x446   : > { %1795 = vmatpush.msra.mxu0 %v1775_v40 }
 0x447   : > { %1597 = vmatpush.msrb.mxu1 %v1587_v48 }
 0x448   : > { %1796 = vmatpush.msra.mxu0 %v1774_v41 }
 0x449   : > { %1598 = vmatpush.msrb.mxu1 %v1586_v49 }
 0x44a   : > { %1797 = vmatpush.msra.mxu0 %v1773_v42 }
 0x44b   : > { %1599 = vmatpush.msrb.mxu1 %v1585_v50 }
 0x44c   : > { %1798 = vmatpush.msra.mxu0 %v1772_v43 }
 0x44d   : > { %1600 = vmatpush.msrb.mxu1 %v1584_v51 }
 0x44e   : > { %1799 = vmatpush.msra.mxu0 %v1771_v44 }
 0x44f   : > { %1601 = vmatpush.msrb.mxu1 %v1583_v53 }
 0x450   : > { %1800 = vmatpush.msra.mxu0 %v1770_v59 }
 0x451   : > { %1602 = vmatpush.msrb.mxu1 %v1582_v55  ;;  %v1724_v55 = vld [vmem:[#allocation11] sm:$0x1] }
 0x453   : > { %1603 = vmatpush.msrb.mxu1 %v1581_v57 }
 0x455   : > { %1604 = vmatpush.msrb.mxu1 %v1580_v60  ;;  %v1769_v60 = vld [vmem:[%s3257_s13 + $0x8] sm:$0xff] }
 0x456   : > { %1801 = vmatpush.msra.mxu0 %v1769_v60 }
 0x457   : > { %1605 = vmatpush.msrb.mxu1 %v1579_v63 }
 0x458   : > { %1802 = vmatpush.msra.mxu0 %v1768_v61 }
 0x459   : > { %1606 = vmatpush.msrb.mxu1 %v1578_v4 }
 0x45b   : > { %1607 = vmatpush.msrb.mxu1 %v1577_v11 }
 0x45d   : > { %1748 = vmatpush.msra.mxu1 %v1741_v16 }
 0x45f   : > { %1749 = vmatpush.msra.mxu1 %v1740_v17 }
 0x461   : > { %1750 = vmatpush.msra.mxu1 %v1739_v18 }
 0x463   : > { %1751 = vmatpush.msra.mxu1 %v1738_v19 }
 0x465   : > { %1752 = vmatpush.msra.mxu1 %v1737_v20 }
 0x467   : > { %1753 = vmatpush.msra.mxu1 %v1736_v21 }
 0x469   : > { %1754 = vmatpush.msra.mxu1 %v1735_v28 }
 0x46b   : > { %1755 = vmatpush.msra.mxu1 %v1734_v29 }
 0x46d   : > { %1756 = vmatpush.msra.mxu1 %v1733_v30 }
 0x46f   : > { %1757 = vmatpush.msra.mxu1 %v1732_v31 }
 0x471   : > { %1758 = vmatpush.msra.mxu1 %v1731_v32 }
 0x473   : > { %1759 = vmatpush.msra.mxu1 %v1730_v33 }
 0x475   : > { %1760 = vmatpush.msra.mxu1 %v1729_v34 }
 0x477   : > { %1761 = vmatpush.msra.mxu1 %v1728_v35 }
 0x479   : > { %1762 = vmatpush.msra.mxu1 %v1727_v36 }
 0x4c1   : > { %v1501_v22 = vpop.f32.mrf.mxu1 }
 0x4c2   : > { %v1530_v23 = vrot.slane %v1501_v22, 1  ;;  %v1589_v24 = vrot.slane %v1501_v22, 2  ;;  %v1626_v25 = vrot.slane %v1501_v22, 3  ;;  %2050 = vmatmul.msk.f32.vlgmr.msra.gmra.mxu3 %vm1531_vm13, %v1501_v22  ;;  %v1700_v26 = vrot.slane %v1501_v22, 5 }
 0x4c3   : > { %v1663_v27 = vrot.slane %v1501_v22, 4 }
 0x4c4   : > { %2049 = vmatmul.msk.f32.vlgmr.msrb.gmra.mxu2 %vm1531_vm13, %v1530_v23  ;;  %2051 = vmatmul.msk.f32.vlgmr.msrb.gmra.mxu1 %vm1531_vm13, %v1589_v24 }
 0x4c5   : > { %2052 = vmatmul.msk.f32.vlgmr.msrb.gmra.mxu0 %vm1531_vm13, %v1626_v25 }
 0x4ca   : > { %2054 = vmatmul.msk.f32.vlgmr.msrb.gmra.mxu3 %vm1531_vm13, %v1700_v26 }
 0x4cc   : > { %2053 = vmatmul.msk.f32.vlgmr.msra.gmra.mxu2 %vm1531_vm13, %v1663_v27 }
 0x541   : > { %v1609_v48 = vpop.f32.mrf.mxu1 }
 0x542   : > { %v1646_v50 = vpop.f32.mrf.mxu0 }
 0x545   : > { %v1573_v46 = vpop.f32.mrf.mxu3 }
 0x547   : > { %v1551_v45 = vpop.f32.mrf.mxu2 }
 0x548   : > { %v1574_v47 = vadd.f32 %v1573_v46, %v1551_v45 }
 0x54a   : > { %v1612_v49 = vadd.f32 %v1609_v48, %v1574_v47 }
 0x54c   : > { %v1649_v51 = vadd.f32 %v1646_v50, %v1612_v49 }
 0x54d   : > { %v1720_v54 = vpop.f32.mrf.mxu3 }
 0x54f   : > { %v1683_v52 = vpop.f32.mrf.mxu2 }
 0x550   : > { %v1686_v53 = vadd.f32 %v1683_v52, %v1649_v51 }
 0x552   : > { %v1723_v56 = vadd.f32 %v1720_v54, %v1686_v53 }
 0x554   : > { %v1725_v57 = vadd.f32 %v1724_v55, %v1723_v56 }
 0x556   : > { %v1726_v58 = vmax.f32 %v1725_v57, 0.0 }
 0x558   : > { %2055 = vmatmul.msk.f32.vlgmr.msra.gmra.mxu1 %vm1743_vm14, %v1726_v58 }
 0x5d5   : > { %v1764_v63 = vpop.f32.mrf.mxu1 }
 0x5d6   : > { %v1765_v0 = vadd.f32 %v1764_v63, %v1742_v62 }
 0x5d8   : > { %v1767_v2 = vmax.f32 %v1765_v0, 0.0 }
 0x5da   : > { %2057 = vmatmul.msk.f32.vlgmr.msra.gmra.mxu0 %vm1780_vm15, %v1767_v2 }
 0x657   : > { %v1804_v4 = vpop.f32.mrf.mxu0 }
 0x658   : > { %v1805_v6 = vadd.f32 %v1804_v4, %v1779_v3 }
 0x65a   : > { %1808 = vst.msk [vmem:[%s609_s29] sm:$0x1] %vm1807_vm0, %v1805_v6 }
 0x65b   : > { %2457 = shalt.err (!%p2454_p8)
}
 0x65c   : > { %2097 = dma.vmem_to_hbm [thread:$0]  (%p2645_p5), %s1821_s26, 16, %s1823_s17, %s1810_s25  }
 0x65d PF: > { %s3290_s28 = sld [smem:[#allocation26_spill]] }
 0x65e   : > { %s3291_s24 = sld [smem:[#allocation23_spill]] }
 0x663   : > { %p2144_p9 = scmp.ge.s32.totalorder %s3290_s28, 2 }
 0x664   : > { %s1834_s5 = sand.u32 1, %s3291_s24  }
 0x665   : > { %p2125_p10 = pnand %p2144_p9, %p2649_p6  ;;  %s1835_s23 = scalar_lea.sflag [#allocation4], %s1834_s5 }
 0x667   : > { %p2126_p11 = pneg %p2125_p10 }
 0x669   : > { %2495 = dma.done.wait (%p2126_p11), %s1835_s23, 16  }
 0x66a   : > { %2497 = vsyncadd (%p2126_p11), %s1835_s23, 4294967280  ;;  %s3293_s21 = sld [smem:[#allocation27_spill]] }
 0x66b   : > { %s3294_s18 = sld [smem:[#allocation24_spill]] }
 0x66c   : > { %s3295_s19 = sld [smem:[#allocation25_spill]] }
 0x66d   : > { %s3296_s20 = sld [smem:[#allocation28_spill]] }
 0x670   : > { %p30_p12 = scmp.ge.s32.totalorder %s3293_s21, 4  }
 0x672   :  { %32 = sbr.rel (!%p30_p12) target bundleno = 12 (0xc), region = 157 }
 0x677   :  { %1840 = vsyncpa [#allocation3], 1 }
 0x678   :  { %1842 = vsyncpa [#allocation3 + $0x1], 1 }
 0x679   :  { %1843 = vsyncpa [#allocation6], 1 }
 0x67a   :  { %1844 = vsyncpa [#allocation9], 1 }
 0x67b   :  { %1845 = vsyncpa [#allocation12], 1 }
 0x67c   :  { %1846 = vsyncpa [#allocation15], 1 }
 0x67d   :  { %1847 = vsyncpa [#allocation4], 1 }
 0x67e   :  { %1849 = vsyncpa [#allocation4 + $0x1], 1 }

</bundles_post_ra>
